<compile_context>
chip_gen: v7x
topology: tpu7x:2x2x1
jax: 0.10.0
libtpu: 0.0.40
codegen_flags: <defaults>
</compile_context>

<pallas_src>
import functools

import jax
import jax.numpy as jnp
from jax.experimental import pallas as pl
from jax.experimental.pallas import tpu as pltpu


# --------------------------------------------------------------------------- #
# Helpers                                                                      #
# --------------------------------------------------------------------------- #
def _sublane_align(dtype):
    """Minimum sublane multiple for the dtype (8 for 4B, 16 for 2B, 32 for 1B)."""
    return {4: 8, 2: 16, 1: 32}.get(jnp.dtype(dtype).itemsize, 8)


def _pick_tile(dim, target, align):
    """Largest tile <= target that is a multiple of `align` and divides `dim`
    (falls back to the full dimension, which is always a legal block size)."""
    if dim <= target:
        return dim
    t = (target // align) * align
    while t >= align:
        if dim % t == 0:
            return t
        t -= align
    return dim


def _vmem_limit_bytes():
    """Scoped-VMEM limit: ~85% of physical capacity; safe fallback of 64 MiB."""
    try:
        cap = int(pltpu.get_tpu_info().vmem_capacity_bytes)
    except Exception:
        cap = 64 * 1024 * 1024
    return max(32 * 1024 * 1024, int(cap * 0.85))


# --------------------------------------------------------------------------- #
# Kernel 1: returns (output, attn) — softmax over the full Lk row per q-tile.  #
# --------------------------------------------------------------------------- #
def _sdpa_attn_kernel(*refs, inv_temperature, has_mask, causal, mxu_dtype):
    if has_mask:
        q_ref, k_ref, v_ref, bias_ref, out_ref, attn_ref = refs
    else:
        q_ref, k_ref, v_ref, out_ref, attn_ref = refs
        bias_ref = None

    q = q_ref[0, 0]            # (tq, Dk) in the input dtype
    k = k_ref[0, 0]            # (Lk, Dk)
    v = v_ref[0, 0]            # (Lk, Dv)
    tq = q.shape[0]
    lk = k.shape[0]

    # Scale the (tq, Dk) q tile, not the (tq, Lk) score matrix (fewer VALU ops;
    # matches the PyTorch `q / temperature`).
    q = q * jnp.asarray(inv_temperature, dtype=q.dtype)
    if mxu_dtype is not None:
        q = q.astype(mxu_dtype)
        k = k.astype(mxu_dtype)

    # q @ k^T — contract head_dim without materializing k.T; f32 accumulation.
    s = jax.lax.dot_general(
        q, k, dimension_numbers=(((1,), (1,)), ((), ())),
        preferred_element_type=jnp.float32)                     # (tq, Lk)

    if bias_ref is not None:
        s = s + bias_ref[0, 0].astype(jnp.float32)              # additive 0 / -1e9

    if causal:
        q0 = pl.program_id(2) * tq
        rows = q0 + jax.lax.broadcasted_iota(jnp.int32, (tq, lk), 0)
        cols = jax.lax.broadcasted_iota(jnp.int32, (tq, lk), 1)
        s = jnp.where(cols <= rows, s, jnp.float32(-1e9))

    # Numerically-stable softmax over the last axis.
    s = s - jnp.max(s, axis=-1, keepdims=True)
    p = jnp.exp(s)
    denom = jnp.sum(p, axis=-1, keepdims=True)
    # Approx reciprocal on the EUP + one Newton step (frees VALU, ~f32 accurate).
    r = pl.reciprocal(denom, approx=True)
    r = r * (jnp.float32(2.0) - denom * r)
    attn = p * r                                                # (tq, Lk)

    pv_dtype = mxu_dtype if mxu_dtype is not None else v.dtype
    out = jnp.dot(attn.astype(pv_dtype), v.astype(pv_dtype),
                  preferred_element_type=jnp.float32)
    out_ref[0, 0] = out.astype(out_ref.dtype)
    attn_ref[0, 0] = attn.astype(attn_ref.dtype)


# --------------------------------------------------------------------------- #
# Kernel 2: flash-style online softmax, output only (no attn writeback).       #
# --------------------------------------------------------------------------- #
def _sdpa_flash_kernel(*refs, inv_temperature, has_mask, causal, mxu_dtype):
    if has_mask:
        q_ref, k_ref, v_ref, bias_ref, out_ref, m_sc, l_sc, acc_sc = refs
    else:
        q_ref, k_ref, v_ref, out_ref, m_sc, l_sc, acc_sc = refs
        bias_ref = None

    qi = pl.program_id(2)
    ki = pl.program_id(3)
    tq = q_ref.shape[2]
    tk = k_ref.shape[2]

    @pl.when(ki == 0)
    def _():
        m_sc[...] = jnp.full_like(m_sc, -jnp.inf)
        l_sc[...] = jnp.zeros_like(l_sc)
        acc_sc[...] = jnp.zeros_like(acc_sc)

    def _update():
        q = q_ref[0, 0]
        k = k_ref[0, 0]
        v = v_ref[0, 0]
        q = q * jnp.asarray(inv_temperature, dtype=q.dtype)
        if mxu_dtype is not None:
            q = q.astype(mxu_dtype)
            k = k.astype(mxu_dtype)

        s = jax.lax.dot_general(
            q, k, dimension_numbers=(((1,), (1,)), ((), ())),
            preferred_element_type=jnp.float32)                 # (tq, tk)

        if bias_ref is not None:
            s = s + bias_ref[0, 0].astype(jnp.float32)

        if causal:
            rows = qi * tq + jax.lax.broadcasted_iota(jnp.int32, (tq, tk), 0)
            cols = ki * tk + jax.lax.broadcasted_iota(jnp.int32, (tq, tk), 1)
            s = jnp.where(cols <= rows, s, jnp.float32(-1e9))

        m_prev = m_sc[...]
        m_new = jnp.maximum(m_prev, jnp.max(s, axis=-1, keepdims=True))
        alpha = jnp.exp(m_prev - m_new)
        p = jnp.exp(s - m_new)
        l_sc[...] = alpha * l_sc[...] + jnp.sum(p, axis=-1, keepdims=True)
        pv_dtype = mxu_dtype if mxu_dtype is not None else v.dtype
        acc_sc[...] = alpha * acc_sc[...] + jnp.dot(
            p.astype(pv_dtype), v.astype(pv_dtype),
            preferred_element_type=jnp.float32)
        m_sc[...] = m_new

    if causal:
        # Skip KV tiles that lie entirely above the diagonal for this q tile.
        @pl.when(ki * tk <= qi * tq + (tq - 1))
        def _():
            _update()
    else:
        _update()

    @pl.when(ki == pl.num_programs(3) - 1)
    def _():
        l = l_sc[...]
        r = pl.reciprocal(l, approx=True)
        r = r * (jnp.float32(2.0) - l * r)          # one Newton step
        out_ref[0, 0] = (acc_sc[...] * r).astype(out_ref.dtype)


# --------------------------------------------------------------------------- #
# Wrapper                                                                      #
# --------------------------------------------------------------------------- #
def scaled_dot_product_attention(q, k, v, temperature, mask=None, *,
                                 causal=False, return_attn=True,
                                 block_q=256, block_k=512,
                                 mxu_dtype=None, attn_dtype=None):
    """Pallas-TPU scaled dot-product attention (eval-mode forward).

    q: (B, H, Lq, Dk), k: (B, H, Lk, Dk), v: (B, H, Lk, Dv)
    mask: optional, broadcastable to (B, 1, Lq, Lk); positions where mask == 0 are
          filled with -1e9 before softmax. Kept at its natural shape (no HBM broadcast).
    causal: build the causal mask in-kernel (no mask DMA) and skip above-diagonal tiles.
    mxu_dtype: e.g. jnp.bfloat16 to feed the MXU bf16 operands (f32 accumulation).
    attn_dtype: dtype for the returned attention matrix (default: q.dtype).
    return_attn=True  -> (output, attn)   (matches the PyTorch module)
    return_attn=False -> (output, None)   (flash-style, no O(L^2) attn writeback)
    """
    B, H, Lq, Dk = q.shape
    Lk = k.shape[2]
    Dv = v.shape[3]
    inv_temperature = 1.0 / float(temperature)

    align_q = _sublane_align(q.dtype)
    tq = _pick_tile(Lq, block_q, align_q)
    vmem_limit = _vmem_limit_bytes()

    # --- mask -> additive bias at its NATURAL shape (no broadcast materialization) ---
    has_mask = mask is not None
    bias = None
    if has_mask:
        m = jnp.asarray(mask)
        while m.ndim < 4:
            m = m[None]
        Bm, Hm, Mq, Mk = m.shape
        if Bm not in (1, B) or Hm not in (1, H) or Mq not in (1, Lq) or Mk not in (1, Lk):
            raise ValueError(f"mask shape {m.shape} not broadcastable to {(B, H, Lq, Lk)}")
        if Mk != Lk:                       # only the (cheap) key axis is broadcast
            m = jnp.broadcast_to(m, (Bm, Hm, Mq, Lk))
        # bf16 additive bias: 0 kept / -1e9 masked. Fully-masked rows give a uniform
        # softmax row (same as PyTorch masked_fill + softmax).
        bias = jnp.where(m == 0, jnp.float32(-1e9), jnp.float32(0.0)).astype(jnp.bfloat16)
        bq = tq if Mq == Lq else 1

        def _bias_idx3(b, h, qi):
            return (b if Bm == B else 0, h if Hm == H else 0,
                    qi if Mq == Lq else 0, 0)

        def _bias_idx4(b, h, qi, ki):
            return (b if Bm == B else 0, h if Hm == H else 0,
                    qi if Mq == Lq else 0, ki)

    # ----------------------------------------------------------------------- #
    # Path 1: (output, attn)                                                   #
    # ----------------------------------------------------------------------- #
    if return_attn:
        attn_out_dtype = jnp.dtype(attn_dtype) if attn_dtype is not None else q.dtype
        bpe_in = jnp.dtype(q.dtype).itemsize
        attn_bpe = jnp.dtype(attn_out_dtype).itemsize

        def _est(tq_):
            fixed = 2 * Lk * (Dk + Dv) * bpe_in                      # K, V (dbl-buffered)
            per_q = 2 * tq_ * (Dk + Dv) * bpe_in + 2 * tq_ * Lk * attn_bpe
            if has_mask:
                per_q += 2 * (tq_ if Mq == Lq else 1) * Lk * 2
            return fixed + per_q + tq_ * Lk * 4                      # + f32 score temp

        # Shrink tq if the full-Lk working set would not fit the scoped VMEM.
        while _est(tq) > int(vmem_limit * 0.7) and tq > align_q:
            new_tq = _pick_tile(Lq, max(align_q, tq // 2), align_q)
            if new_tq >= tq:
                break
            tq = new_tq

        grid = (B, H, Lq // tq)
        in_specs = [
            pl.BlockSpec((1, 1, tq, Dk), lambda b, h, qi: (b, h, qi, 0)),
            pl.BlockSpec((1, 1, Lk, Dk), lambda b, h, qi: (b, h, 0, 0)),
            pl.BlockSpec((1, 1, Lk, Dv), lambda b, h, qi: (b, h, 0, 0)),
        ]
        args = [q, k, v]
        if has_mask:
            in_specs.append(pl.BlockSpec((1, 1, bq, Lk), _bias_idx3))
            args.append(bias)

        kernel = functools.partial(
            _sdpa_attn_kernel, inv_temperature=inv_temperature,
            has_mask=has_mask, causal=causal, mxu_dtype=mxu_dtype)

        out, attn = pl.pallas_call(
            kernel,
            out_shape=(
                jax.ShapeDtypeStruct((B, H, Lq, Dv), q.dtype),
                jax.ShapeDtypeStruct((B, H, Lq, Lk), attn_out_dtype),
            ),
            grid_spec=pltpu.PrefetchScalarGridSpec(
                num_scalar_prefetch=0, grid=grid, in_specs=in_specs,
                out_specs=[
                    pl.BlockSpec((1, 1, tq, Dv), lambda b, h, qi: (b, h, qi, 0)),
                    pl.BlockSpec((1, 1, tq, Lk), lambda b, h, qi: (b, h, qi, 0)),
                ],
            ),
            compiler_params=pltpu.CompilerParams(
                dimension_semantics=("parallel", "parallel", "parallel"),
                vmem_limit_bytes=vmem_limit),
        )(*args)
        return out, attn

    # ----------------------------------------------------------------------- #
    # Path 2: flash-style, output only                                         #
    # ----------------------------------------------------------------------- #
    tk = _pick_tile(Lk, block_k, 128)
    grid = (B, H, Lq // tq, Lk // tk)
    in_specs = [
        pl.BlockSpec((1, 1, tq, Dk), lambda b, h, qi, ki: (b, h, qi, 0)),
        pl.BlockSpec((1, 1, tk, Dk), lambda b, h, qi, ki: (b, h, ki, 0)),
        pl.BlockSpec((1, 1, tk, Dv), lambda b, h, qi, ki: (b, h, ki, 0)),
    ]
    args = [q, k, v]
    if has_mask:
        in_specs.append(pl.BlockSpec((1, 1, bq, tk), _bias_idx4))
        args.append(bias)

    kernel = functools.partial(
        _sdpa_flash_kernel, inv_temperature=inv_temperature,
        has_mask=has_mask, causal=causal, mxu_dtype=mxu_dtype)

    out = pl.pallas_call(
        kernel,
        out_shape=jax.ShapeDtypeStruct((B, H, Lq, Dv), q.dtype),
        grid_spec=pltpu.PrefetchScalarGridSpec(
            num_scalar_prefetch=0, grid=grid, in_specs=in_specs,
            out_specs=pl.BlockSpec((1, 1, tq, Dv),
                                   lambda b, h, qi, ki: (b, h, qi, 0)),
            scratch_shapes=[
                pltpu.VMEM((tq, 1), jnp.float32),    # running max m
                pltpu.VMEM((tq, 1), jnp.float32),    # running denom l
                pltpu.VMEM((tq, Dv), jnp.float32),   # output accumulator
            ],
        ),
        compiler_params=pltpu.CompilerParams(
            dimension_semantics=("parallel", "parallel", "parallel", "arbitrary"),
            vmem_limit_bytes=vmem_limit),
    )(*args)
    return out, None


# --------------------------------------------------------------------------- #
# Pure-JAX reference (mirrors the PyTorch forward in eval mode).               #
# --------------------------------------------------------------------------- #
def _reference(q, k, v, temperature, mask=None):
    hi = jax.lax.Precision.HIGHEST
    attn = jnp.matmul(q / temperature, jnp.swapaxes(k, 2, 3), precision=hi)
    if mask is not None:
        attn = jnp.where(mask == 0, -1e9, attn)
    attn = jax.nn.softmax(attn, axis=-1)
    out = jnp.matmul(attn, v, precision=hi)
    return out, attn


if __name__ == "__main__":
    key = jax.random.PRNGKey(0)
    kq, kk, kv = jax.random.split(key, 3)

    B, H, L, D = 2, 2, 256, 64
    temperature = float(D) ** 0.5

    q = jax.random.normal(kq, (B, H, L, D), dtype=jnp.float32)
    k = jax.random.normal(kk, (B, H, L, D), dtype=jnp.float32)
    v = jax.random.normal(kv, (B, H, L, D), dtype=jnp.float32)

    causal_mask = jnp.broadcast_to(
        jnp.tril(jnp.ones((L, L), jnp.int32))[None, None], (B, 1, L, L))
    ref_out_c, ref_attn_c = _reference(q, k, v, temperature, mask=causal_mask)

    # 1) (output, attn) path with an explicit (B,1,Lq,Lk) mask — matches PyTorch.
    out, attn = scaled_dot_product_attention(q, k, v, temperature, mask=causal_mask)
    jax.block_until_ready((out, attn))
    assert out.shape == (B, H, L, D) and attn.shape == (B, H, L, L)
    assert jnp.allclose(out, ref_out_c, atol=1e-4, rtol=1e-4)
    assert jnp.allclose(attn, ref_attn_c, atol=1e-4, rtol=1e-4)

    # 2) Key-padding mask at its natural (B,1,1,Lk) shape (no HBM broadcast).
    lengths = jnp.array([L, L - 64])
    pad_mask = (jnp.arange(L)[None, :] < lengths[:, None]).astype(jnp.int32)
    pad_mask = pad_mask[:, None, None, :]
    ref_out_p, ref_attn_p = _reference(q, k, v, temperature, mask=pad_mask)
    out_p, attn_p = scaled_dot_product_attention(q, k, v, temperature, mask=pad_mask)
    jax.block_until_ready((out_p, attn_p))
    assert jnp.allclose(out_p, ref_out_p, atol=1e-4, rtol=1e-4)
    assert jnp.allclose(attn_p, ref_attn_p, atol=1e-4, rtol=1e-4)

    # 3) Flash path with an explicit mask (smaller tiles to exercise the kv loop).
    out_f, attn_f = scaled_dot_product_attention(
        q, k, v, temperature, mask=causal_mask, return_attn=False,
        block_q=128, block_k=128)
    jax.block_until_ready(out_f)
    assert attn_f is None
    assert jnp.allclose(out_f, ref_out_c, atol=2e-3, rtol=2e-3)

    # 4) Causal fast path: mask built in-kernel, above-diagonal KV tiles skipped.
    out_cf, _ = scaled_dot_product_attention(
        q, k, v, temperature, causal=True, return_attn=False,
        block_q=64, block_k=128)
    out_ca, attn_ca = scaled_dot_product_attention(q, k, v, temperature, causal=True)
    jax.block_until_ready((out_cf, out_ca, attn_ca))
    assert jnp.allclose(out_cf, ref_out_c, atol=2e-3, rtol=2e-3)
    assert jnp.allclose(out_ca, ref_out_c, atol=1e-4, rtol=1e-4)
    assert jnp.allclose(attn_ca, ref_attn_c, atol=1e-4, rtol=1e-4)

    # 5) Unmasked, both paths (mask-free kernel variants; dropout identity in eval).
    ref_out_u, ref_attn_u = _reference(q, k, v, temperature)
    out_u, attn_u = scaled_dot_product_attention(q, k, v, temperature)
    out_uf, _ = scaled_dot_product_attention(q, k, v, temperature, return_attn=False)
    jax.block_until_ready((out_u, attn_u, out_uf))
    assert jnp.allclose(out_u, ref_out_u, atol=1e-4, rtol=1e-4)
    assert jnp.allclose(attn_u, ref_attn_u, atol=1e-4, rtol=1e-4)
    assert jnp.allclose(out_uf, ref_out_u, atol=2e-3, rtol=2e-3)

    # 6) bf16-MXU option for f32 inputs (~3x MXU throughput, looser tolerance).
    out_b, attn_b = scaled_dot_product_attention(
        q, k, v, temperature, mask=causal_mask, mxu_dtype=jnp.bfloat16)
    jax.block_until_ready((out_b, attn_b))
    assert jnp.allclose(out_b, ref_out_c, atol=5e-2, rtol=5e-2)
    assert jnp.allclose(attn_b, ref_attn_c, atol=5e-2, rtol=5e-2)

    # 7) Tiny, non-tile-aligned shapes (full-axis fallback blocks).
    Ls, Ds = 8, 32
    qs = jax.random.normal(kq, (B, H, Ls, Ds), dtype=jnp.float32)
    ks = jax.random.normal(kk, (B, H, Ls, Ds), dtype=jnp.float32)
    vs = jax.random.normal(kv, (B, H, Ls, Ds), dtype=jnp.float32)
    masks = jnp.broadcast_to(
        jnp.tril(jnp.ones((Ls, Ls), jnp.int32))[None, None], (B, 1, Ls, Ls))
    ref_out_s, ref_attn_s = _reference(qs, ks, vs, float(Ds) ** 0.5, mask=masks)
    out_s, attn_s = scaled_dot_product_attention(qs, ks, vs, float(Ds) ** 0.5, mask=masks)
    out_sf, _ = scaled_dot_product_attention(qs, ks, vs, float(Ds) ** 0.5, mask=masks,
                                             return_attn=False)
    jax.block_until_ready((out_s, attn_s, out_sf))
    assert jnp.allclose(out_s, ref_out_s, atol=1e-4, rtol=1e-4)
    assert jnp.allclose(attn_s, ref_attn_s, atol=1e-4, rtol=1e-4)
    assert jnp.allclose(out_sf, ref_out_s, atol=2e-3, rtol=2e-3)

    print("KERNEL_OK")
</pallas_src>

<mosaic_0001>
module attributes {stable_mosaic.version = 11 : i64} {
  func.func @_sdpa_attn_kernel(%arg0: i32, %arg1: i32, %arg2: i32, %arg3: memref<1x1x256x64xf32, #tpu.memory_space<vmem>>, %arg4: memref<1x1x256x64xf32, #tpu.memory_space<vmem>>, %arg5: memref<1x1x256x64xf32, #tpu.memory_space<vmem>>, %arg6: memref<1x1x256x256xbf16, #tpu.memory_space<vmem>>, %arg7: memref<1x1x256x64xf32, #tpu.memory_space<vmem>>, %arg8: memref<1x1x256x256xf32, #tpu.memory_space<vmem>>) attributes {dimension_semantics = [#tpu.dimension_semantics<parallel>, #tpu.dimension_semantics<parallel>, #tpu.dimension_semantics<parallel>], iteration_bounds = array<i64: 2, 2, 1>, scalar_prefetch = 0 : i64, scratch_operands = 0 : i64, tpu.core_type = #tpu.core_type<tc>, window_params = [{transform_indices = @transform_0, window_bounds = array<i64: 1, 1, 256, 64>}, {transform_indices = @transform_1, window_bounds = array<i64: 1, 1, 256, 64>}, {transform_indices = @transform_2, window_bounds = array<i64: 1, 1, 256, 64>}, {transform_indices = @transform_3, window_bounds = array<i64: 1, 1, 256, 256>}, {transform_indices = @transform_4, window_bounds = array<i64: 1, 1, 256, 64>}, {transform_indices = @transform_5, window_bounds = array<i64: 1, 1, 256, 256>}]} {
    %c0 = arith.constant 0 : index
    %c0_0 = arith.constant 0 : index
    %c0_1 = arith.constant 0 : index
    %c0_2 = arith.constant 0 : index
    %0 = vector.load %arg3[%c0, %c0_0, %c0_1, %c0_2] : memref<1x1x256x64xf32, #tpu.memory_space<vmem>>, vector<1x1x256x64xf32>
    %1 = vector.shape_cast %0 : vector<1x1x256x64xf32> to vector<256x64xf32>
    %c0_3 = arith.constant 0 : index
    %c0_4 = arith.constant 0 : index
    %c0_5 = arith.constant 0 : index
    %c0_6 = arith.constant 0 : index
    %2 = vector.load %arg4[%c0_3, %c0_4, %c0_5, %c0_6] : memref<1x1x256x64xf32, #tpu.memory_space<vmem>>, vector<1x1x256x64xf32>
    %3 = vector.shape_cast %2 : vector<1x1x256x64xf32> to vector<256x64xf32>
    %c0_7 = arith.constant 0 : index
    %c0_8 = arith.constant 0 : index
    %c0_9 = arith.constant 0 : index
    %c0_10 = arith.constant 0 : index
    %4 = vector.load %arg5[%c0_7, %c0_8, %c0_9, %c0_10] : memref<1x1x256x64xf32, #tpu.memory_space<vmem>>, vector<1x1x256x64xf32>
    %5 = vector.shape_cast %4 : vector<1x1x256x64xf32> to vector<256x64xf32>
    %cst = arith.constant 1.250000e-01 : f32
    %6 = vector.broadcast %cst : f32 to vector<256x64xf32>
    %7 = arith.mulf %1, %6 : vector<256x64xf32>
    %cst_11 = arith.constant dense<0.000000e+00> : vector<256x256xf32>
    %8 = tpu.matmul %7, %3, %cst_11 {dimension_numbers = #tpu.dot_dimension_numbers<[1], [1], [0], [0], [0, 0, 1, 0], [], []>} : vector<256x64xf32>, vector<256x64xf32>, vector<256x256xf32> -> vector<256x256xf32>
    %c0_12 = arith.constant 0 : index
    %c0_13 = arith.constant 0 : index
    %c0_14 = arith.constant 0 : index
    %c0_15 = arith.constant 0 : index
    %9 = vector.load %arg6[%c0_12, %c0_13, %c0_14, %c0_15] : memref<1x1x256x256xbf16, #tpu.memory_space<vmem>>, vector<1x1x256x256xbf16>
    %10 = vector.shape_cast %9 : vector<1x1x256x256xbf16> to vector<256x256xbf16>
    %11 = arith.extf %10 : vector<256x256xbf16> to vector<256x256xf32>
    %12 = arith.addf %8, %11 : vector<256x256xf32>
    %cst_16 = arith.constant dense<0xFF800000> : vector<256xf32>
    %13 = vector.multi_reduction <maximumf>, %12, %cst_16 [1] : vector<256x256xf32> to vector<256xf32>
    %14 = vector.shape_cast %13 : vector<256xf32> to vector<256x1xf32>
    %15 = vector.broadcast %14 : vector<256x1xf32> to vector<256x256xf32>
    %16 = arith.subf %12, %15 : vector<256x256xf32>
    %17 = math.exp %16 : vector<256x256xf32>
    %cst_17 = arith.constant dense<0.000000e+00> : vector<256xf32>
    %18 = vector.multi_reduction <add>, %17, %cst_17 [1] : vector<256x256xf32> to vector<256xf32>
    %19 = vector.shape_cast %18 : vector<256xf32> to vector<256x1xf32>
    %20 = tpu.reciprocal %19 {approx = true} : vector<256x1xf32> -> vector<256x1xf32>
    %21 = arith.mulf %19, %20 : vector<256x1xf32>
    %cst_18 = arith.constant 2.000000e+00 : f32
    %22 = vector.broadcast %cst_18 : f32 to vector<256x1xf32>
    %23 = arith.subf %22, %21 : vector<256x1xf32>
    %24 = arith.mulf %20, %23 : vector<256x1xf32>
    %25 = vector.broadcast %24 : vector<256x1xf32> to vector<256x256xf32>
    %26 = arith.mulf %17, %25 : vector<256x256xf32>
    %cst_19 = arith.constant dense<0.000000e+00> : vector<256x64xf32>
    %27 = tpu.matmul %26, %5, %cst_19 {dimension_numbers = #tpu.dot_dimension_numbers<[1], [0], [0], [1], [0, 0, 1, 1], [], []>} : vector<256x256xf32>, vector<256x64xf32>, vector<256x64xf32> -> vector<256x64xf32>
    %c0_20 = arith.constant 0 : index
    %c0_21 = arith.constant 0 : index
    %c0_22 = arith.constant 0 : index
    %c0_23 = arith.constant 0 : index
    %28 = vector.load %arg7[%c0_20, %c0_21, %c0_22, %c0_23] : memref<1x1x256x64xf32, #tpu.memory_space<vmem>>, vector<1x1x256x64xf32>
    %29 = vector.shape_cast %28 : vector<1x1x256x64xf32> to vector<256x64xf32>
    %30 = vector.shape_cast %27 : vector<256x64xf32> to vector<1x1x256x64xf32>
    tpu.vector_store %arg7[%c0_20, %c0_21, %c0_22, %c0_23], %30 {strides = array<i32>} : memref<1x1x256x64xf32, #tpu.memory_space<vmem>>, vector<1x1x256x64xf32>,
    %c0_24 = arith.constant 0 : index
    %c0_25 = arith.constant 0 : index
    %c0_26 = arith.constant 0 : index
    %c0_27 = arith.constant 0 : index
    %31 = vector.load %arg8[%c0_24, %c0_25, %c0_26, %c0_27] : memref<1x1x256x256xf32, #tpu.memory_space<vmem>>, vector<1x1x256x256xf32>
    %32 = vector.shape_cast %31 : vector<1x1x256x256xf32> to vector<256x256xf32>
    %33 = vector.shape_cast %26 : vector<256x256xf32> to vector<1x1x256x256xf32>
    tpu.vector_store %arg8[%c0_24, %c0_25, %c0_26, %c0_27], %33 {strides = array<i32>} : memref<1x1x256x256xf32, #tpu.memory_space<vmem>>, vector<1x1x256x256xf32>,
    return
  }
  func.func @transform_0(%arg0: i32, %arg1: i32, %arg2: i32) -> (i32, i32, i32, i32) {
    %c0_i32 = arith.constant 0 : i32
    %c0_i32_0 = arith.constant 0 : i32
    return %arg0, %arg1, %arg2, %c0_i32 : i32, i32, i32, i32
  }
  func.func @transform_1(%arg0: i32, %arg1: i32, %arg2: i32) -> (i32, i32, i32, i32) {
    %c0_i32 = arith.constant 0 : i32
    %c0_i32_0 = arith.constant 0 : i32
    %c0_i32_1 = arith.constant 0 : i32
    return %arg0, %arg1, %c0_i32, %c0_i32_0 : i32, i32, i32, i32
  }
  func.func @transform_2(%arg0: i32, %arg1: i32, %arg2: i32) -> (i32, i32, i32, i32) {
    %c0_i32 = arith.constant 0 : i32
    %c0_i32_0 = arith.constant 0 : i32
    %c0_i32_1 = arith.constant 0 : i32
    return %arg0, %arg1, %c0_i32, %c0_i32_0 : i32, i32, i32, i32
  }
  func.func @transform_3(%arg0: i32, %arg1: i32, %arg2: i32) -> (i32, i32, i32, i32) {
    %c0_i32 = arith.constant 0 : i32
    %c0_i32_0 = arith.constant 0 : i32
    %c0_i32_1 = arith.constant 0 : i32
    return %arg0, %c0_i32, %arg2, %c0_i32_0 : i32, i32, i32, i32
  }
  func.func @transform_4(%arg0: i32, %arg1: i32, %arg2: i32) -> (i32, i32, i32, i32) {
    %c0_i32 = arith.constant 0 : i32
    %c0_i32_0 = arith.constant 0 : i32
    return %arg0, %arg1, %arg2, %c0_i32 : i32, i32, i32, i32
  }
  func.func @transform_5(%arg0: i32, %arg1: i32, %arg2: i32) -> (i32, i32, i32, i32) {
    %c0_i32 = arith.constant 0 : i32
    %c0_i32_0 = arith.constant 0 : i32
    return %arg0, %arg1, %arg2, %c0_i32 : i32, i32, i32, i32
  }
}

</mosaic_0001>

<bundles_post_ra>
// kernel: tpu_custom_call.1
= control target key start
LH: loop header
LB: loop body
LE: loop exit
PB: predicated region body
PF: predicated region fallthrough
CT: control target
= control target key end

     0   :  { %s3974_s0 = inlined_call_operand.vmem [shape: f32[2,2,256,64], index: 0, kind: input, shape index: {}]   ;;  %s3975_s1 = inlined_call_operand.vmem [shape: f32[2,2,256,64], index: 1, kind: input, shape index: {}]   ;;  %s3976_s2 = inlined_call_operand.vmem [shape: f32[2,2,256,64], index: 2, kind: input, shape index: {}]   ;;  %s3977_s3 = inlined_call_operand.vmem [shape: bf16[2,1,256,256], index: 3, kind: input, shape index: {}]   ;;  %s3978_s4 = inlined_call_operand.vmem [shape: f32[2,2,256,64], index: 4, kind: output, shape index: {0}]   ;;  %s3979_s5 = inlined_call_operand.hbm [shape: f32[2,2,256,256], index: 5, kind: output, shape index: {1}]  }
   0x1   :  { %4012 = sst [smem:[#allocation22_spill]] %s3974_s0 }
   0x2   :  { %11 = vsyncpa [#allocation3], 0 }
   0x3   :  { %13 = vsyncpa [#allocation3 + $0x1], 0  ;;  %s2909_s18 = smov 0   ;;  %s2911_s19 = smov 0  }
   0x4   :  { %s2913_s20 = smov 0   ;;  %s2915_s21 = smov 0  }
   0x5   :  { %s2917_s22 = smov 0   ;;  %s2919_s23 = smov 0  }
   0x6   :  { %s2921_s24 = smov 0   ;;  %s2923_s25 = smov 0  }
   0x7 LB: > { %s2230_s26 = sadd.s32 4294967295, %s2873_s25   ;;  %s2231_s27 = sadd.s32 4294967294, %s2873_s25   ;;  %s2873_s25 = sphi %s2923_s25, %s19_s25   ;;  %s2869_s24 = sphi %s2921_s24, %s4087_s24   ;;  %s2865_s23 = sphi %s2919_s23, %s4086_s23   ;;  %s2861_s22 = sphi %s2917_s22, %s4085_s22   ;;  %s2857_s21 = sphi %s2915_s21, %s4084_s21   ;;  %s2853_s20 = sphi %s2913_s20, %s4083_s20   ;;  %s2849_s19 = sphi %s2911_s19, %s4082_s19   ;;  %s2845_s18 = sphi %s2909_s18, %s4081_s18  }
   0x8   : > { %s34_s28 = sadd.s32 1, %s2865_s23  ;;  %s38_s29 = sadd.s32 1, %s2869_s24 }
   0x9   : > { %p36_p0 = scmp.ge.s32.totalorder %s34_s28, 2  ;;  %p203_p1 = scmp.ne.s32.totalorder %s2853_s20, %s2849_s19 }
   0xa   : > { %p204_p2 = scmp.eq.s32.totalorder %s2230_s26, 3  ;;  %p209_p5 = scmp.ne.s32.totalorder %s2849_s19, %s2845_s18 }
   0xb   : > { %s4089_s28 = smov (%p36_p0, %s34_s28), 0  ;;  %s4091_s29 = smov (!%p36_p0, %s38_s29), %s2869_s24 }
   0xc   : > { %s187_s30 = ssub.s32 %s2865_s23, %s4089_s28  ;;  %p2960_p3 = por %p204_p2, %p203_p1 }
   0xd   : > { %p40_p4 = scmp.ge.s32.totalorder %s4091_s29, 2  ;;  %p210_p6 = scmp.eq.s32.totalorder %s2231_s27, 3 }
   0xe   : > { %p2234_p7 = scmp.ge.s32.totalorder %s2873_s25, 1  ;;  %p283_p9 = scmp.lt.s32.totalorder %s2873_s25, 5 }
   0xf   : > { %s4093_s29 = smov (%p40_p4, %s4091_s29), 0  ;;  %p2969_p8 = por %p210_p6, %p209_p5 }
  0x10   : > { %s186_s8 = ssub.s32 %s2869_s24, %s4093_s29  ;;  %s193_s9 = sadd.s32 1, %s2853_s20 }
  0x11   : > { %s188_s10 = sor.u32 %s187_s30, %s186_s8  ;;  %p284_p10 = pnand %p2234_p7, %p283_p9 }
  0x12   : > { %p191_p11 = scmp.eq.s32.totalorder %s188_s10, 0 }
  0x13   : > { %287 = sbr.rel (%p284_p10) target bundleno = 978 (0x3d2), region = 36 }
  0x14   : > { %s2978_s11 = scalar_select %p191_p11, %s2853_s20, %s193_s9  }
  0x1a   : > { %p361_p12 = scmp.lt.s32.totalorder %s2861_s22, 1  ;;  %p363_p13 = scmp.lt.s32.totalorder %s2857_s21, 1  ;;  %vm642_vm0 = vcmask 523264  }
  0x1b   : > { %vm2997_vm1 = vmpackc.low %vm642_vm0, %vm642_vm0  ;;  %s4017_s0 = sld [smem:[#allocation22_spill]] }
  0x1c   : > { %s2983_s12 = scalar_select %p361_p12, %s2861_s22, 1 }
  0x1d   : > { %s364_s13 = scalar_select %p363_p13, %s2857_s21, 1 }
  0x1e   : > { %s2237_s14 = sshll.u32 %s2983_s12, 6 }
  0x1f   : > { %s2236_s15 = sshll.u32 %s364_s13, 5  ;;  %s2320_s13 = sshll.u32 %s2983_s12, 8 }
  0x20   : > { %s370_s16 = sadd.s32 %s2237_s14, %s2236_s15 }
  0x21   : > { %s2987_s17 = sshll.u32 %s370_s16, 3  ;;  %s3171_s16 = scalar_lea.vmem %s3977_s3, %s2320_s13 }
  0x22   : > { %s2993_s30 = scalar_lea.vmem %s3975_s1, %s2987_s17  ;;  %s3021_s10 = scalar_lea.vmem %s4017_s0, %s2987_s17 }
  0x23   : > { %v466_v1 = vld [vmem:[%s2993_s30 + $0x80] sm:$0xff]  ;;  %v467_v2 = vld [vmem:[%s2993_s30 + $0x88] sm:$0xff]  ;;  %v468_v6 = vld [vmem:[%s2993_s30 + $0x90] sm:$0xff]  ;;  %s3401_s27 = scalar_lea.vmem %s3976_s2, %s2987_s17  ;;  %s2316_s13 = sshll.u32 %s2861_s22, 7 }
  0x24   : > { %v450_v3 = vld [vmem:[%s2993_s30] sm:$0xff]  ;;  %v2417_v4 = vpack.c.bf16 %v467_v2, %v466_v1  ;;  %v451_v5 = vld [vmem:[%s2993_s30 + $0x8] sm:$0xff]  ;;  %v469_v7 = vld [vmem:[%s2993_s30 + $0x98] sm:$0xff]  ;;  %s3854_s0 = scalar_lea.vmem %s3978_s4, %s2987_s17 }
  0x25   : > { %v2420_v8 = vpack.c.bf16 %v451_v5, %v450_v3  ;;  %v2423_v9 = vpack.c.bf16 %v469_v7, %v468_v6  ;;  %v452_v10 = vld [vmem:[%s2993_s30 + $0x10] sm:$0xff]  ;;  %v453_v11 = vld [vmem:[%s2993_s30 + $0x18] sm:$0xff]  ;;  %v470_v12 = vld [vmem:[%s2993_s30 + $0xa0] sm:$0xff] }
  0x26   : > { %2419 = vmatprep.subr.msk.bf16.mxu0 %vm2997_vm1, %v2417_v4  ;;  %v471_v13 = vld [vmem:[%s2993_s30 + $0xa8] sm:$0xff]  ;;  %v2426_v14 = vpack.c.bf16 %v453_v11, %v452_v10  ;;  %v418_v16 = vld [vmem:[%s3021_s10] sm:$0xff]  ;;  %v472_v20 = vld [vmem:[%s2993_s30 + $0xb0] sm:$0xff] }
  0x27   : > { %2422 = vmatpush3.bf16.xpose.msk.msra.mxu0 %vm2997_vm1, %v2420_v8  ;;  %v2429_v15 = vpack.c.bf16 %v471_v13, %v470_v12  ;;  %v514_v17 = vmul.f32 0.125, %v418_v16  ;;  %v454_v18 = vld [vmem:[%s2993_s30 + $0x20] sm:$0xff]  ;;  %v455_v19 = vld [vmem:[%s2993_s30 + $0x28] sm:$0xff]  ;;  %v473_v21 = vld [vmem:[%s2993_s30 + $0xb8] sm:$0xff] }
  0x28   : > { %2425 = vmatprep.subr.msk.bf16.mxu0 %vm2997_vm1, %v2423_v9  ;;  %v2432_v22 = vpack.c.bf16 %v455_v19, %v454_v18  ;;  %v2435_v23 = vpack.c.bf16 %v473_v21, %v472_v20  ;;  %v456_v24 = vld [vmem:[%s2993_s30 + $0x30] sm:$0xff]  ;;  %v457_v25 = vld [vmem:[%s2993_s30 + $0x38] sm:$0xff]  ;;  %v474_v26 = vld [vmem:[%s2993_s30 + $0xc0] sm:$0xff] }
  0x29   : > { %2353 = vmatprep.mubr.msk.f32.mxu0 %vm642_vm0, %v514_v17  ;;  %v475_v27 = vld [vmem:[%s2993_s30 + $0xc8] sm:$0xff]  ;;  %v2438_v28 = vpack.c.bf16 %v457_v25, %v456_v24  ;;  %v458_v30 = vld [vmem:[%s2993_s30 + $0x40] sm:$0xff]  ;;  %v476_v32 = vld [vmem:[%s2993_s30 + $0xd0] sm:$0xff] }
  0x2a   : > { %v2441_v29 = vpack.c.bf16 %v475_v27, %v474_v26  ;;  %v459_v31 = vld [vmem:[%s2993_s30 + $0x48] sm:$0xff]  ;;  %v477_v33 = vld [vmem:[%s2993_s30 + $0xd8] sm:$0xff]  ;;  %v460_v36 = vld [vmem:[%s2993_s30 + $0x50] sm:$0xff] }
  0x2b   : > { %v2444_v34 = vpack.c.bf16 %v459_v31, %v458_v30  ;;  %v2447_v35 = vpack.c.bf16 %v477_v33, %v476_v32  ;;  %v461_v37 = vld [vmem:[%s2993_s30 + $0x58] sm:$0xff]  ;;  %v478_v38 = vld [vmem:[%s2993_s30 + $0xe0] sm:$0xff]  ;;  %v479_v39 = vld [vmem:[%s2993_s30 + $0xe8] sm:$0xff] }
  0x2c   : > { %v2450_v40 = vpack.c.bf16 %v461_v37, %v460_v36  ;;  %v2453_v41 = vpack.c.bf16 %v479_v39, %v478_v38  ;;  %v462_v42 = vld [vmem:[%s2993_s30 + $0x60] sm:$0xff]  ;;  %v463_v43 = vld [vmem:[%s2993_s30 + $0x68] sm:$0xff]  ;;  %v480_v44 = vld [vmem:[%s2993_s30 + $0xf0] sm:$0xff] }
  0x2d   : > { %v481_v45 = vld [vmem:[%s2993_s30 + $0xf8] sm:$0xff]  ;;  %v2456_v46 = vpack.c.bf16 %v463_v43, %v462_v42  ;;  %v464_v48 = vld [vmem:[%s2993_s30 + $0x70] sm:$0xff]  ;;  %v419_v51 = vld [vmem:[%s3021_s10 + $0x8] sm:$0xff] }
  0x2e   : > { %v2459_v47 = vpack.c.bf16 %v481_v45, %v480_v44  ;;  %v465_v49 = vld [vmem:[%s2993_s30 + $0x78] sm:$0xff]  ;;  %v515_v52 = vmul.f32 0.125, %v419_v51  ;;  %v420_v53 = vld [vmem:[%s3021_s10 + $0x10] sm:$0xff]  ;;  %v422_v57 = vld [vmem:[%s3021_s10 + $0x20] sm:$0xff]  ;;  %s4011_s30 = sand.u32 1, %s2849_s19  }
  0x2f   : > { %2428 = vmatpush3.bf16.xpose.msk.msra.mxu0 %vm2997_vm1, %v2426_v14  ;;  %v2462_v50 = vpack.c.bf16 %v465_v49, %v464_v48  ;;  %v516_v54 = vmul.f32 0.125, %v420_v53  ;;  %v421_v55 = vld [vmem:[%s3021_s10 + $0x18] sm:$0xff]  ;;  %v518_v58 = vmul.f32 0.125, %v422_v57  ;;  %v423_v59 = vld [vmem:[%s3021_s10 + $0x28] sm:$0xff]  ;;  %v424_v61 = vld [vmem:[%s3021_s10 + $0x30] sm:$0xff]  ;;  %s2235_s8 = sshll.u32 %s4011_s30, 9 }
  0x30   : > { %2431 = vmatprep.subr.msk.bf16.mxu0 %vm2997_vm1, %v2429_v15  ;;  %v517_v56 = vmul.f32 0.125, %v421_v55  ;;  %v519_v60 = vmul.f32 0.125, %v423_v59  ;;  %v520_v62 = vmul.f32 0.125, %v424_v61  ;;  %v425_v63 = vld [vmem:[%s3021_s10 + $0x38] sm:$0xff]  ;;  %v426_v1 = vld [vmem:[%s3021_s10 + $0x40] sm:$0xff]  ;;  %v427_v3 = vld [vmem:[%s3021_s10 + $0x48] sm:$0xff] }
  0x31   : > { %v521_v0 = vmul.f32 0.125, %v425_v63  ;;  %v522_v2 = vmul.f32 0.125, %v426_v1  ;;  %v523_v4 = vmul.f32 0.125, %v427_v3  ;;  %v428_v5 = vld [vmem:[%s3021_s10 + $0x50] sm:$0xff]  ;;  %v429_v7 = vld [vmem:[%s3021_s10 + $0x58] sm:$0xff]  ;;  %v430_v9 = vld [vmem:[%s3021_s10 + $0x60] sm:$0xff] }
  0x32   : > { %v524_v6 = vmul.f32 0.125, %v428_v5  ;;  %v525_v8 = vmul.f32 0.125, %v429_v7  ;;  %v526_v10 = vmul.f32 0.125, %v430_v9  ;;  %v431_v11 = vld [vmem:[%s3021_s10 + $0x68] sm:$0xff]  ;;  %v432_v13 = vld [vmem:[%s3021_s10 + $0x70] sm:$0xff]  ;;  %v433_v15 = vld [vmem:[%s3021_s10 + $0x78] sm:$0xff] }
  0x33   : > { %v527_v12 = vmul.f32 0.125, %v431_v11  ;;  %v528_v14 = vmul.f32 0.125, %v432_v13  ;;  %v529_v16 = vmul.f32 0.125, %v433_v15  ;;  %v435_v19 = vld [vmem:[%s3021_s10 + $0x88] sm:$0xff]  ;;  %v436_v21 = vld [vmem:[%s3021_s10 + $0x90] sm:$0xff]  ;;  %v438_v25 = vld [vmem:[%s3021_s10 + $0xa0] sm:$0xff] }
  0x34   : > { %v531_v20 = vmul.f32 0.125, %v435_v19  ;;  %v534_v26 = vmul.f32 0.125, %v438_v25  ;;  %v439_v27 = vld [vmem:[%s3021_s10 + $0xa8] sm:$0xff]  ;;  %v441_v31 = vld [vmem:[%s3021_s10 + $0xb8] sm:$0xff]  ;;  %v442_v33 = vld [vmem:[%s3021_s10 + $0xc0] sm:$0xff]  ;;  %s3712_s9 = scalar_lea.vmem [#allocation2], %s2235_s8 }
  0x35   : > { %v537_v32 = vmul.f32 0.125, %v441_v31  ;;  %v444_v37 = vld [vmem:[%s3021_s10 + $0xd0] sm:$0xff]  ;;  %v445_v39 = vld [vmem:[%s3021_s10 + $0xd8] sm:$0xff]  ;;  %v447_v43 = vld [vmem:[%s3021_s10 + $0xe8] sm:$0xff] }
  0x36   : > { %v540_v38 = vmul.f32 0.125, %v444_v37  ;;  %v543_v44 = vmul.f32 0.125, %v447_v43  ;;  %v448_v45 = vld [vmem:[%s3021_s10 + $0xf0] sm:$0xff]  ;;  %v546_v49 = vld [vmem:[%s3171_s16] sm:$0xff]  ;;  %v549_v3 = vld [vmem:[%s3171_s16 + $0x18] sm:$0xff] }
  0x37   : > { %2434 = vmatpush3.bf16.xpose.msk.msra.mxu0 %vm2997_vm1, %v2432_v22  ;;  %v532_v22 = vmul.f32 0.125, %v436_v21  ;;  %v579_v51 = vunpack.c.h.bf16 %v546_v49  ;;  %v548_v59 = vld [vmem:[%s3171_s16 + $0x10] sm:$0xff]  ;;  %v550_v11 = vld [vmem:[%s3171_s16 + $0x20] sm:$0xff]  ;;  %v551_v19 = vld [vmem:[%s3171_s16 + $0x28] sm:$0xff] }
  0x38   : > { %2437 = vmatprep.subr.msk.bf16.mxu0 %vm2997_vm1, %v2435_v23  ;;  %v437_v23 = vld [vmem:[%s3021_s10 + $0x98] sm:$0xff]  ;;  %v554_v43 = vld [vmem:[%s3171_s16 + $0x40] sm:$0xff] }
  0x39   : > { %v533_v24 = vmul.f32 0.125, %v437_v23 }
  0x3f   : > { %2440 = vmatpush3.bf16.xpose.msk.msra.mxu0 %vm2997_vm1, %v2438_v28  ;;  %v535_v28 = vmul.f32 0.125, %v439_v27  ;;  %v552_v27 = vld [vmem:[%s3171_s16 + $0x30] sm:$0xff] }
  0x40   : > { %2443 = vmatprep.subr.msk.bf16.mxu0 %vm2997_vm1, %v2441_v29  ;;  %v440_v29 = vld [vmem:[%s3021_s10 + $0xb0] sm:$0xff] }
  0x41   : > { %v536_v30 = vmul.f32 0.125, %v440_v29 }
  0x47   : > { %2446 = vmatpush3.bf16.xpose.msk.msra.mxu0 %vm2997_vm1, %v2444_v34  ;;  %v538_v34 = vmul.f32 0.125, %v442_v33 }
  0x48   : > { %2449 = vmatprep.subr.msk.bf16.mxu0 %vm2997_vm1, %v2447_v35  ;;  %v443_v35 = vld [vmem:[%s3021_s10 + $0xc8] sm:$0xff] }
  0x49   : > { %v539_v36 = vmul.f32 0.125, %v443_v35  ;;  %v553_v35 = vld [vmem:[%s3171_s16 + $0x38] sm:$0xff] }
  0x4f   : > { %2452 = vmatpush3.bf16.xpose.msk.msra.mxu0 %vm2997_vm1, %v2450_v40  ;;  %v541_v40 = vmul.f32 0.125, %v445_v39 }
  0x50   : > { %2455 = vmatprep.subr.msk.bf16.mxu0 %vm2997_vm1, %v2453_v41  ;;  %v446_v41 = vld [vmem:[%s3021_s10 + $0xe0] sm:$0xff] }
  0x51   : > { %v542_v42 = vmul.f32 0.125, %v446_v41 }
  0x57   : > { %2458 = vmatpush3.bf16.xpose.msk.msra.mxu0 %vm2997_vm1, %v2456_v46  ;;  %v544_v46 = vmul.f32 0.125, %v448_v45 }
  0x58   : > { %2461 = vmatprep.subr.msk.bf16.mxu0 %vm2997_vm1, %v2459_v47  ;;  %v449_v47 = vld [vmem:[%s3021_s10 + $0xf8] sm:$0xff] }
  0x59   : > { %v545_v48 = vmul.f32 0.125, %v449_v47 }
  0x5f   : > { %2464 = vmatpush3.bf16.xpose.msk.msra.mxu0 %vm2997_vm1, %v2462_v50  ;;  %v578_v50 = vunpack.c.l.bf16 %v546_v49 }
  0x66   : > { %2354 = vmatmul.mubr.msk.f32.vlgmr.msra.gmra.mrb[0].mxu0 %vm642_vm0, %v514_v17  ;;  %v434_v17 = vld [vmem:[%s3021_s10 + $0x80] sm:$0xff]  ;;  %s2315_s10 = sshll.u32 %s2857_s21, 6  ;;  %s4080_s21 = sand.u32 1, %s2849_s19  }
  0x67   : > { %2355 = vmatprep.mubr.msk.f32.mxu0 %vm642_vm0, %v515_v52  ;;  %v530_v18 = vmul.f32 0.125, %v434_v17  ;;  %s2022_s14 = sadd.s32 %s2316_s13, %s2315_s10  ;;  %s3858_s22 = scalar_lea.sflag [#allocation3], %s4080_s21 }
  0x68   : > { %s2317_s15 = sshll.u32 %s2022_s14, 7 }
  0x6a   : > { %2356 = vmatmul.mubr.msk.f32.gmra.mrb[2].mxu0 %vm642_vm0, %v515_v52  ;;  %v547_v52 = vld [vmem:[%s3171_s16 + $0x8] sm:$0xff] }
  0x6b   : > { %2357 = vmatprep.mubr.msk.f32.mxu0 %vm642_vm0, %v516_v54 }
  0x6e   : > { %2358 = vmatmul.mubr.msk.f32.gmra.mrb[4].mxu0 %vm642_vm0, %v516_v54 }
  0x6f   : > { %2359 = vmatprep.mubr.msk.f32.mxu0 %vm642_vm0, %v517_v56 }
  0x72   : > { %2360 = vmatmul.mubr.msk.f32.gmra.mrb[6].mxu0 %vm642_vm0, %v517_v56  ;;  %v580_v56 = vunpack.c.l.bf16 %v547_v52 }
  0x73   : > { %2361 = vmatprep.mubr.msk.f32.mxu0 %vm642_vm0, %v518_v58 }
  0x76   : > { %2362 = vmatmul.mubr.msk.f32.gmra.mrb[8].mxu0 %vm642_vm0, %v518_v58  ;;  %v581_v58 = vunpack.c.h.bf16 %v547_v52 }
  0x77   : > { %2363 = vmatprep.mubr.msk.f32.mxu0 %vm642_vm0, %v519_v60 }
  0x7a   : > { %2364 = vmatmul.mubr.msk.f32.gmra.mrb[10].mxu0 %vm642_vm0, %v519_v60 }
  0x7b   : > { %2365 = vmatprep.mubr.msk.f32.mxu0 %vm642_vm0, %v520_v62 }
  0x7e   : > { %2366 = vmatmul.mubr.msk.f32.gmra.mrb[12].mxu0 %vm642_vm0, %v520_v62 }
  0x7f   : > { %2367 = vmatprep.mubr.msk.f32.mxu0 %vm642_vm0, %v521_v0 }
  0x82   : > { %2368 = vmatmul.mubr.msk.f32.gmra.mrb[14].mxu0 %vm642_vm0, %v521_v0  ;;  %v582_v0 = vunpack.c.l.bf16 %v548_v59 }
  0x83   : > { %2369 = vmatprep.mubr.msk.f32.mxu0 %vm642_vm0, %v522_v2 }
  0x86   : > { %2370 = vmatmul.mubr.msk.f32.gmra.mrb[16].mxu0 %vm642_vm0, %v522_v2  ;;  %v583_v2 = vunpack.c.h.bf16 %v548_v59 }
  0x87   : > { %2371 = vmatprep.mubr.msk.f32.mxu0 %vm642_vm0, %v523_v4 }
  0x8a   : > { %2372 = vmatmul.mubr.msk.f32.gmra.mrb[18].mxu0 %vm642_vm0, %v523_v4 }
  0x8b   : > { %2373 = vmatprep.mubr.msk.f32.mxu0 %vm642_vm0, %v524_v6 }
  0x8e   : > { %2374 = vmatmul.mubr.msk.f32.gmra.mrb[20].mxu0 %vm642_vm0, %v524_v6 }
  0x8f   : > { %2375 = vmatprep.mubr.msk.f32.mxu0 %vm642_vm0, %v525_v8 }
  0x92   : > { %2376 = vmatmul.mubr.msk.f32.gmra.mrb[22].mxu0 %vm642_vm0, %v525_v8  ;;  %v584_v8 = vunpack.c.l.bf16 %v549_v3 }
  0x93   : > { %2377 = vmatprep.mubr.msk.f32.mxu0 %vm642_vm0, %v526_v10 }
  0x96   : > { %2378 = vmatmul.mubr.msk.f32.gmra.mrb[24].mxu0 %vm642_vm0, %v526_v10  ;;  %v585_v10 = vunpack.c.h.bf16 %v549_v3 }
  0x97   : > { %2379 = vmatprep.mubr.msk.f32.mxu0 %vm642_vm0, %v527_v12 }
  0x9a   : > { %2380 = vmatmul.mubr.msk.f32.gmra.mrb[26].mxu0 %vm642_vm0, %v527_v12 }
  0x9b   : > { %2381 = vmatprep.mubr.msk.f32.mxu0 %vm642_vm0, %v528_v14 }
  0x9e   : > { %2382 = vmatmul.mubr.msk.f32.gmra.mrb[28].mxu0 %vm642_vm0, %v528_v14 }
  0x9f   : > { %2383 = vmatprep.mubr.msk.f32.mxu0 %vm642_vm0, %v529_v16 }
  0xa2   : > { %2384 = vmatmul.mubr.msk.f32.gmra.mrb[30].mxu0 %vm642_vm0, %v529_v16  ;;  %v586_v16 = vunpack.c.l.bf16 %v550_v11 }
  0xa3   : > { %2385 = vmatprep.mubr.msk.f32.mxu0 %vm642_vm0, %v530_v18 }
  0xa6   : > { %2386 = vmatmul.mubr.msk.f32.gmra.mrb[32].mxu0 %vm642_vm0, %v530_v18  ;;  %v587_v18 = vunpack.c.h.bf16 %v550_v11 }
  0xa7   : > { %2387 = vmatprep.mubr.msk.f32.mxu0 %vm642_vm0, %v531_v20 }
  0xaa   : > { %2388 = vmatmul.mubr.msk.f32.gmra.mrb[34].mxu0 %vm642_vm0, %v531_v20 }
  0xab   : > { %2389 = vmatprep.mubr.msk.f32.mxu0 %vm642_vm0, %v532_v22 }
  0xae   : > { %2390 = vmatmul.mubr.msk.f32.gmra.mrb[36].mxu0 %vm642_vm0, %v532_v22 }
  0xaf   : > { %2391 = vmatprep.mubr.msk.f32.mxu0 %vm642_vm0, %v533_v24 }
  0xb2   : > { %2392 = vmatmul.mubr.msk.f32.gmra.mrb[38].mxu0 %vm642_vm0, %v533_v24  ;;  %v588_v24 = vunpack.c.l.bf16 %v551_v19 }
  0xb3   : > { %2393 = vmatprep.mubr.msk.f32.mxu0 %vm642_vm0, %v534_v26 }
  0xb6   : > { %2394 = vmatmul.mubr.msk.f32.gmra.mrb[40].mxu0 %vm642_vm0, %v534_v26  ;;  %v589_v26 = vunpack.c.h.bf16 %v551_v19  ;;  %v558_v19 = vld [vmem:[%s3171_s16 + $0x60] sm:$0xff] }
  0xb7   : > { %2395 = vmatprep.mubr.msk.f32.mxu0 %vm642_vm0, %v535_v28 }
  0xba   : > { %2396 = vmatmul.mubr.msk.f32.gmra.mrb[42].mxu0 %vm642_vm0, %v535_v28 }
  0xbb   : > { %2397 = vmatprep.mubr.msk.f32.mxu0 %vm642_vm0, %v536_v30 }
  0xbe   : > { %2398 = vmatmul.mubr.msk.f32.gmra.mrb[44].mxu0 %vm642_vm0, %v536_v30 }
  0xbf   : > { %2399 = vmatprep.mubr.msk.f32.mxu0 %vm642_vm0, %v537_v32 }
  0xc2   : > { %2400 = vmatmul.mubr.msk.f32.gmra.mrb[46].mxu0 %vm642_vm0, %v537_v32  ;;  %v590_v32 = vunpack.c.l.bf16 %v552_v27 }
  0xc3   : > { %2401 = vmatprep.mubr.msk.f32.mxu0 %vm642_vm0, %v538_v34 }
  0xc6   : > { %2402 = vmatmul.mubr.msk.f32.gmra.mrb[48].mxu0 %vm642_vm0, %v538_v34  ;;  %v591_v34 = vunpack.c.h.bf16 %v552_v27 }
  0xc7   : > { %2403 = vmatprep.mubr.msk.f32.mxu0 %vm642_vm0, %v539_v36 }
  0xca   : > { %2404 = vmatmul.mubr.msk.f32.gmra.mrb[50].mxu0 %vm642_vm0, %v539_v36 }
  0xcb   : > { %2405 = vmatprep.mubr.msk.f32.mxu0 %vm642_vm0, %v540_v38 }
  0xce   : > { %2406 = vmatmul.mubr.msk.f32.gmra.mrb[52].mxu0 %vm642_vm0, %v540_v38 }
  0xcf   : > { %2407 = vmatprep.mubr.msk.f32.mxu0 %vm642_vm0, %v541_v40 }
  0xd2   : > { %2408 = vmatmul.mubr.msk.f32.gmra.mrb[54].mxu0 %vm642_vm0, %v541_v40  ;;  %v592_v40 = vunpack.c.l.bf16 %v553_v35 }
  0xd3   : > { %2409 = vmatprep.mubr.msk.f32.mxu0 %vm642_vm0, %v542_v42 }
  0xd6   : > { %2410 = vmatmul.mubr.msk.f32.gmra.mrb[56].mxu0 %vm642_vm0, %v542_v42  ;;  %v593_v42 = vunpack.c.h.bf16 %v553_v35 }
  0xd7   : > { %2411 = vmatprep.mubr.msk.f32.mxu0 %vm642_vm0, %v543_v44 }
  0xda   : > { %2412 = vmatmul.mubr.msk.f32.gmra.mrb[58].mxu0 %vm642_vm0, %v543_v44 }
  0xdb   : > { %2413 = vmatprep.mubr.msk.f32.mxu0 %vm642_vm0, %v544_v46 }
  0xde   : > { %2414 = vmatmul.mubr.msk.f32.gmra.mrb[60].mxu0 %vm642_vm0, %v544_v46 }
  0xdf   : > { %2415 = vmatprep.mubr.msk.f32.mxu0 %vm642_vm0, %v545_v48 }
  0xe2   : > { %2416 = vmatmul.mubr.msk.f32.gmra.mrb[62].mxu0 %vm642_vm0, %v545_v48  ;;  %v594_v48 = vunpack.c.l.bf16 %v554_v43 }
 0x139   : > { %v901_v53 = vpop.f32.mrb[0].mxu0 }
 0x13a   : > { %v3175_v54 = vadd.f32 %v901_v53, %v578_v50  ;;  %v903_v55 = vpop.f32.mrb[1].mxu0  ;;  %v595_v50 = vunpack.c.h.bf16 %v554_v43 }
 0x13b   : > { %v3177_v57 = vadd.f32 %v903_v55, %v579_v51  ;;  %v555_v51 = vld [vmem:[%s3171_s16 + $0x48] sm:$0xff] }
 0x13d   : > { %v907_v60 = vpop.f32.mrb[2].mxu0  ;;  %v1092_v61 = vmax.f32 %v3175_v54, %v3177_v57 }
 0x13e   : > { %v3182_v62 = vadd.f32 %v907_v60, %v580_v56  ;;  %v909_v63 = vpop.f32.mrb[3].mxu0  ;;  %v597_v60 = vunpack.c.h.bf16 %v555_v51 }
 0x13f   : > { %v3184_v1 = vadd.f32 %v909_v63, %v581_v58  ;;  %1093 = vmax.xlane.f32.xlu0 %v1092_v61  ;;  %v596_v58 = vunpack.c.l.bf16 %v555_v51  ;;  %v556_v61 = vld [vmem:[%s3171_s16 + $0x50] sm:$0xff]  ;;  %v561_v51 = vld [vmem:[%s3171_s16 + $0x78] sm:$0xff] }
 0x141   : > { %v913_v4 = vpop.f32.mrb[4].mxu0  ;;  %v1095_v5 = vmax.f32 %v3182_v62, %v3184_v1 }
 0x142   : > { %v3189_v6 = vadd.f32 %v913_v4, %v582_v0  ;;  %v915_v7 = vpop.f32.mrb[5].mxu0  ;;  %v598_v4 = vunpack.c.l.bf16 %v556_v61 }
 0x143   : > { %v3191_v9 = vadd.f32 %v915_v7, %v583_v2  ;;  %1096 = vmax.xlane.f32.xlu0 %v1095_v5  ;;  %v599_v7 = vunpack.c.h.bf16 %v556_v61 }
 0x145   : > { %v919_v12 = vpop.f32.mrb[6].mxu0  ;;  %v1098_v13 = vmax.f32 %v3189_v6, %v3191_v9 }
 0x146   : > { %v3196_v14 = vadd.f32 %v919_v12, %v584_v8  ;;  %v921_v15 = vpop.f32.mrb[7].mxu0  ;;  %v557_v8 = vld [vmem:[%s3171_s16 + $0x58] sm:$0xff] }
 0x147   : > { %v3198_v17 = vadd.f32 %v921_v15, %v585_v10  ;;  %1099 = vmax.xlane.f32.xlu1 %v1098_v13  ;;  %v600_v15 = vunpack.c.l.bf16 %v557_v8 }
 0x149   : > { %v925_v20 = vpop.f32.mrb[8].mxu0  ;;  %v1101_v21 = vmax.f32 %v3196_v14, %v3198_v17 }
 0x14a   : > { %v3203_v22 = vadd.f32 %v925_v20, %v586_v16  ;;  %v927_v23 = vpop.f32.mrb[9].mxu0 }
 0x14b   : > { %v3205_v25 = vadd.f32 %v927_v23, %v587_v18  ;;  %1102 = vmax.xlane.f32.xlu1 %v1101_v21  ;;  %v601_v18 = vunpack.c.h.bf16 %v557_v8 }
 0x14d   : > { %v931_v28 = vpop.f32.mrb[10].mxu0  ;;  %v1104_v29 = vmax.f32 %v3203_v22, %v3205_v25 }
 0x14e   : > { %v3210_v30 = vadd.f32 %v931_v28, %v588_v24  ;;  %v933_v31 = vpop.f32.mrb[11].mxu0  ;;  %v603_v28 = vunpack.c.h.bf16 %v558_v19 }
 0x14f   : > { %v3212_v33 = vadd.f32 %v933_v31, %v589_v26  ;;  %1105 = vmax.xlane.f32.xlu0 %v1104_v29  ;;  %v602_v26 = vunpack.c.l.bf16 %v558_v19  ;;  %v559_v29 = vld [vmem:[%s3171_s16 + $0x68] sm:$0xff] }
 0x151   : > { %v937_v36 = vpop.f32.mrb[12].mxu0  ;;  %v1107_v37 = vmax.f32 %v3210_v30, %v3212_v33 }
 0x152   : > { %v3217_v38 = vadd.f32 %v937_v36, %v590_v32  ;;  %v939_v39 = vpop.f32.mrb[13].mxu0  ;;  %v604_v36 = vunpack.c.l.bf16 %v559_v29 }
 0x153   : > { %v3219_v41 = vadd.f32 %v939_v39, %v591_v34  ;;  %1108 = vmax.xlane.f32.xlu1 %v1107_v37  ;;  %v605_v39 = vunpack.c.h.bf16 %v559_v29  ;;  %v564_v29 = vld [vmem:[%s3171_s16 + $0x90] sm:$0xff] }
 0x155   : > { %v943_v44 = vpop.f32.mrb[14].mxu0  ;;  %v1110_v45 = vmax.f32 %v3217_v38, %v3219_v41 }
 0x156   : > { %v3224_v46 = vadd.f32 %v943_v44, %v592_v40  ;;  %v945_v47 = vpop.f32.mrb[15].mxu0  ;;  %v560_v40 = vld [vmem:[%s3171_s16 + $0x70] sm:$0xff] }
 0x157   : > { %v3226_v49 = vadd.f32 %v945_v47, %v593_v42  ;;  %1111 = vmax.xlane.f32.xlu0 %v1110_v45  ;;  %v606_v47 = vunpack.c.l.bf16 %v560_v40 }
 0x159   : > { %v949_v52 = vpop.f32.mrb[16].mxu0  ;;  %v1113_v53 = vmax.f32 %v3224_v46, %v3226_v49 }
 0x15a   : > { %v3231_v55 = vadd.f32 %v949_v52, %v594_v48  ;;  %v951_v56 = vpop.f32.mrb[17].mxu0 }
 0x15b   : > { %v3233_v59 = vadd.f32 %v951_v56, %v595_v50  ;;  %1114 = vmax.xlane.f32.xlu1 %v1113_v53  ;;  %v607_v50 = vunpack.c.h.bf16 %v560_v40 }
 0x15d   : > { %v955_v63 = vpop.f32.mrb[18].mxu0  ;;  %v1116_v0 = vmax.f32 %v3231_v55, %v3233_v59 }
 0x15e   : > { %v3238_v2 = vadd.f32 %v955_v63, %v596_v58  ;;  %v957_v3 = vpop.f32.mrb[19].mxu0  ;;  %v609_v63 = vunpack.c.h.bf16 %v561_v51 }
 0x15f   : > { %v3240_v5 = vadd.f32 %v957_v3, %v597_v60  ;;  %1117 = vmax.xlane.f32.xlu0 %v1116_v0  ;;  %v608_v60 = vunpack.c.l.bf16 %v561_v51  ;;  %v562_v0 = vld [vmem:[%s3171_s16 + $0x80] sm:$0xff] }
 0x161   : > { %v961_v10 = vpop.f32.mrb[20].mxu0  ;;  %v1119_v11 = vmax.f32 %v3238_v2, %v3240_v5 }
 0x162   : > { %v3245_v12 = vadd.f32 %v961_v10, %v598_v4  ;;  %v963_v13 = vpop.f32.mrb[21].mxu0  ;;  %v610_v10 = vunpack.c.l.bf16 %v562_v0 }
 0x163   : > { %v3247_v16 = vadd.f32 %v963_v13, %v599_v7  ;;  %1120 = vmax.xlane.f32.xlu1 %v1119_v11  ;;  %v611_v13 = vunpack.c.h.bf16 %v562_v0 }
 0x165   : > { %v967_v20 = vpop.f32.mrb[22].mxu0  ;;  %v1122_v21 = vmax.f32 %v3245_v12, %v3247_v16 }
 0x166   : > { %v3252_v23 = vadd.f32 %v967_v20, %v600_v15  ;;  %v969_v24 = vpop.f32.mrb[23].mxu0  ;;  %v563_v15 = vld [vmem:[%s3171_s16 + $0x88] sm:$0xff] }
 0x167   : > { %v3254_v27 = vadd.f32 %v969_v24, %v601_v18  ;;  %1123 = vmax.xlane.f32.xlu0 %v1122_v21  ;;  %v612_v24 = vunpack.c.l.bf16 %v563_v15 }
 0x169   : > { %v973_v31 = vpop.f32.mrb[24].mxu0  ;;  %v1125_v32 = vmax.f32 %v3252_v23, %v3254_v27 }
 0x16a   : > { %v3259_v34 = vadd.f32 %v973_v31, %v602_v26  ;;  %v975_v35 = vpop.f32.mrb[25].mxu0 }
 0x16b   : > { %v3261_v37 = vadd.f32 %v975_v35, %v603_v28  ;;  %1126 = vmax.xlane.f32.xlu1 %v1125_v32  ;;  %v613_v28 = vunpack.c.h.bf16 %v563_v15  ;;  %v567_v15 = vld [vmem:[%s3171_s16 + $0xa8] sm:$0xff] }
 0x16d   : > { %v979_v42 = vpop.f32.mrb[26].mxu0  ;;  %v1128_v43 = vmax.f32 %v3259_v34, %v3261_v37 }
 0x16e   : > { %v3266_v44 = vadd.f32 %v979_v42, %v604_v36  ;;  %v981_v45 = vpop.f32.mrb[27].mxu0  ;;  %v615_v42 = vunpack.c.h.bf16 %v564_v29 }
 0x16f   : > { %v3268_v48 = vadd.f32 %v981_v45, %v605_v39  ;;  %1129 = vmax.xlane.f32.xlu0 %v1128_v43  ;;  %v614_v39 = vunpack.c.l.bf16 %v564_v29  ;;  %v565_v43 = vld [vmem:[%s3171_s16 + $0x98] sm:$0xff] }
 0x171   : > { %v985_v52 = vpop.f32.mrb[28].mxu0  ;;  %v1131_v53 = vmax.f32 %v3266_v44, %v3268_v48 }
 0x172   : > { %v3273_v56 = vadd.f32 %v985_v52, %v606_v47  ;;  %v987_v58 = vpop.f32.mrb[29].mxu0  ;;  %v616_v52 = vunpack.c.l.bf16 %v565_v43 }
 0x173   : > { %v3275_v61 = vadd.f32 %v987_v58, %v607_v50  ;;  %1132 = vmax.xlane.f32.xlu1 %v1131_v53  ;;  %v617_v58 = vunpack.c.h.bf16 %v565_v43 }
 0x175   : > { %v991_v3 = vpop.f32.mrb[30].mxu0  ;;  %v1134_v4 = vmax.f32 %v3273_v56, %v3275_v61 }
 0x176   : > { %v3280_v7 = vadd.f32 %v991_v3, %v608_v60  ;;  %v993_v8 = vpop.f32.mrb[31].mxu0  ;;  %v566_v60 = vld [vmem:[%s3171_s16 + $0xa0] sm:$0xff] }
 0x177   : > { %v3282_v11 = vadd.f32 %v993_v8, %v609_v63  ;;  %1135 = vmax.xlane.f32.xlu0 %v1134_v4  ;;  %v618_v8 = vunpack.c.l.bf16 %v566_v60 }
 0x179   : > { %v997_v18 = vpop.f32.mrb[32].mxu0  ;;  %v1137_v19 = vmax.f32 %v3280_v7, %v3282_v11 }
 0x17a   : > { %v3287_v20 = vadd.f32 %v997_v18, %v610_v10  ;;  %v999_v21 = vpop.f32.mrb[33].mxu0 }
 0x17b   : > { %v3289_v26 = vadd.f32 %v999_v21, %v611_v13  ;;  %1138 = vmax.xlane.f32.xlu1 %v1137_v19  ;;  %v619_v13 = vunpack.c.h.bf16 %v566_v60 }
 0x17d   : > { %v1003_v31 = vpop.f32.mrb[34].mxu0  ;;  %v1140_v32 = vmax.f32 %v3287_v20, %v3289_v26 }
 0x17e   : > { %v3294_v35 = vadd.f32 %v1003_v31, %v612_v24  ;;  %v1005_v36 = vpop.f32.mrb[35].mxu0  ;;  %v621_v31 = vunpack.c.h.bf16 %v567_v15 }
 0x17f   : > { %v3296_v40 = vadd.f32 %v1005_v36, %v613_v28  ;;  %1141 = vmax.xlane.f32.xlu0 %v1140_v32  ;;  %v620_v28 = vunpack.c.l.bf16 %v567_v15  ;;  %v568_v32 = vld [vmem:[%s3171_s16 + $0xb0] sm:$0xff]  ;;  %v570_v15 = vld [vmem:[%s3171_s16 + $0xc0] sm:$0xff] }
 0x181   : > { %v1009_v45 = vpop.f32.mrb[36].mxu0  ;;  %v1143_v47 = vmax.f32 %v3294_v35, %v3296_v40 }
 0x182   : > { %v3301_v50 = vadd.f32 %v1009_v45, %v614_v39  ;;  %v1011_v51 = vpop.f32.mrb[37].mxu0  ;;  %v622_v45 = vunpack.c.l.bf16 %v568_v32 }
 0x183   : > { %v3303_v53 = vadd.f32 %v1011_v51, %v615_v42  ;;  %1144 = vmax.xlane.f32.xlu1 %v1143_v47  ;;  %v623_v51 = vunpack.c.h.bf16 %v568_v32 }
 0x185   : > { %v1015_v63 = vpop.f32.mrb[38].mxu0  ;;  %v1146_v0 = vmax.f32 %v3301_v50, %v3303_v53 }
 0x186   : > { %v3308_v3 = vadd.f32 %v1015_v63, %v616_v52  ;;  %v1017_v4 = vpop.f32.mrb[39].mxu0  ;;  %v569_v52 = vld [vmem:[%s3171_s16 + $0xb8] sm:$0xff] }
 0x187   : > { %v3310_v10 = vadd.f32 %v1017_v4, %v617_v58  ;;  %1147 = vmax.xlane.f32.xlu0 %v1146_v0  ;;  %v624_v4 = vunpack.c.l.bf16 %v569_v52 }
 0x189   : > { %v1021_v18 = vpop.f32.mrb[40].mxu0  ;;  %v1149_v19 = vmax.f32 %v3308_v3, %v3310_v10 }
 0x18a   : > { %v3315_v21 = vadd.f32 %v1021_v18, %v618_v8  ;;  %v1023_v24 = vpop.f32.mrb[41].mxu0 }
 0x18b   : > { %v3317_v29 = vadd.f32 %v1023_v24, %v619_v13  ;;  %1150 = vmax.xlane.f32.xlu1 %v1149_v19  ;;  %v625_v13 = vunpack.c.h.bf16 %v569_v52 }
 0x18d   : > { %v1027_v36 = vpop.f32.mrb[42].mxu0  ;;  %v1152_v39 = vmax.f32 %v3315_v21, %v3317_v29 }
 0x18e   : > { %v3322_v42 = vadd.f32 %v1027_v36, %v620_v28  ;;  %v1029_v43 = vpop.f32.mrb[43].mxu0  ;;  %v627_v36 = vunpack.c.h.bf16 %v570_v15 }
 0x18f   : > { %v3324_v47 = vadd.f32 %v1029_v43, %v621_v31  ;;  %1153 = vmax.xlane.f32.xlu0 %v1152_v39  ;;  %v626_v31 = vunpack.c.l.bf16 %v570_v15  ;;  %v571_v39 = vld [vmem:[%s3171_s16 + $0xc8] sm:$0xff] }
 0x191   : > { %v1033_v58 = vpop.f32.mrb[44].mxu0  ;;  %v1155_v60 = vmax.f32 %v3322_v42, %v3324_v47 }
 0x192   : > { %v3329_v63 = vadd.f32 %v1033_v58, %v622_v45  ;;  %v1035_v0 = vpop.f32.mrb[45].mxu0  ;;  %v628_v58 = vunpack.c.l.bf16 %v571_v39 }
 0x193   : > { %v3331_v8 = vadd.f32 %v1035_v0, %v623_v51  ;;  %1156 = vmax.xlane.f32.xlu1 %v1155_v60  ;;  %v629_v0 = vunpack.c.h.bf16 %v571_v39 }
 0x195   : > { %4018 = vst [vmem:[#allocation5_spill] sm:$0xff] %v3331_v8  ;;  %v1039_v18 = vpop.f32.mrb[46].mxu0  ;;  %v1158_v19 = vmax.f32 %v3329_v63, %v3331_v8 }
 0x196   : > { %v3336_v24 = vadd.f32 %v1039_v18, %v624_v4  ;;  %v1041_v28 = vpop.f32.mrb[47].mxu0  ;;  %v572_v4 = vld [vmem:[%s3171_s16 + $0xd0] sm:$0xff] }
 0x197   : > { %v3338_v32 = vadd.f32 %v1041_v28, %v625_v13  ;;  %1159 = vmax.xlane.f32.xlu0 %v1158_v19  ;;  %v630_v28 = vunpack.c.l.bf16 %v572_v4 }
 0x198   : > { %4019 = vst [vmem:[#allocation6_spill] sm:$0xff] %v3336_v24 }
 0x199   : > { %4020 = vst [vmem:[#allocation7_spill] sm:$0xff] %v3338_v32  ;;  %v1045_v43 = vpop.f32.mrb[48].mxu0  ;;  %v1161_v45 = vmax.f32 %v3336_v24, %v3338_v32 }
 0x19a   : > { %v3343_v51 = vadd.f32 %v1045_v43, %v626_v31  ;;  %v1047_v52 = vpop.f32.mrb[49].mxu0  ;;  %v631_v31 = vunpack.c.h.bf16 %v572_v4  ;;  %v573_v43 = vld [vmem:[%s3171_s16 + $0xd8] sm:$0xff] }
 0x19b   : > { %v3345_v60 = vadd.f32 %v1047_v52, %v627_v36  ;;  %1162 = vmax.xlane.f32.xlu0 %v1161_v45  ;;  %v632_v52 = vunpack.c.l.bf16 %v573_v43 }
 0x19c   : > { %4021 = vst [vmem:[#allocation8_spill] sm:$0xff] %v3343_v51 }
 0x19d   : > { %4022 = vst [vmem:[#allocation9_spill] sm:$0xff] %v3345_v60  ;;  %v1051_v18 = vpop.f32.mrb[50].mxu0  ;;  %v1164_v13 = vmax.f32 %v3343_v51, %v3345_v60 }
 0x19e   : > { %v3350_v15 = vadd.f32 %v1051_v18, %v628_v58  ;;  %v1053_v19 = vpop.f32.mrb[51].mxu0  ;;  %v633_v58 = vunpack.c.h.bf16 %v573_v43  ;;  %v574_v18 = vld [vmem:[%s3171_s16 + $0xe0] sm:$0xff] }
 0x19f   : > { %v3352_v32 = vadd.f32 %v1053_v19, %v629_v0  ;;  %1165 = vmax.xlane.f32.xlu0 %v1164_v13  ;;  %v634_v19 = vunpack.c.l.bf16 %v574_v18 }
 0x1a0   : > { %4023 = vst [vmem:[#allocation10_spill] sm:$0xff] %v3350_v15 }
 0x1a1   : > { %4024 = vst [vmem:[#allocation11_spill] sm:$0xff] %v3352_v32  ;;  %v1057_v24 = vpop.f32.mrb[52].mxu0  ;;  %v1167_v36 = vmax.f32 %v3350_v15, %v3352_v32 }
 0x1a2   : > { %v3357_v39 = vadd.f32 %v1057_v24, %v630_v28  ;;  %v1059_v45 = vpop.f32.mrb[53].mxu0  ;;  %v635_v24 = vunpack.c.h.bf16 %v574_v18  ;;  %v575_v28 = vld [vmem:[%s3171_s16 + $0xe8] sm:$0xff] }
 0x1a3   : > { %v3359_v60 = vadd.f32 %v1059_v45, %v631_v31  ;;  %1168 = vmax.xlane.f32.xlu0 %v1167_v36  ;;  %v636_v45 = vunpack.c.l.bf16 %v575_v28 }
 0x1a4   : > { %4025 = vst [vmem:[#allocation12_spill] sm:$0xff] %v3357_v39 }
 0x1a5   : > { %4026 = vst [vmem:[#allocation13_spill] sm:$0xff] %v3359_v60  ;;  %v1063_v51 = vpop.f32.mrb[54].mxu0  ;;  %v1170_v0 = vmax.f32 %v3357_v39, %v3359_v60 }
 0x1a6   : > { %v3364_v4 = vadd.f32 %v1063_v51, %v632_v52  ;;  %v1065_v13 = vpop.f32.mrb[55].mxu0  ;;  %v637_v51 = vunpack.c.h.bf16 %v575_v28  ;;  %v576_v52 = vld [vmem:[%s3171_s16 + $0xf0] sm:$0xff] }
 0x1a7   : > { %v3366_v32 = vadd.f32 %v1065_v13, %v633_v58  ;;  %1171 = vmax.xlane.f32.xlu0 %v1170_v0  ;;  %v638_v13 = vunpack.c.l.bf16 %v576_v52 }
 0x1a8   : > { %4027 = vst [vmem:[#allocation14_spill] sm:$0xff] %v3364_v4 }
 0x1a9   : > { %4028 = vst [vmem:[#allocation15_spill] sm:$0xff] %v3366_v32  ;;  %v1069_v15 = vpop.f32.mrb[56].mxu0  ;;  %v1173_v31 = vmax.f32 %v3364_v4, %v3366_v32 }
 0x1aa   : > { %v3371_v43 = vadd.f32 %v1069_v15, %v634_v19  ;;  %v1071_v36 = vpop.f32.mrb[57].mxu0  ;;  %v639_v15 = vunpack.c.h.bf16 %v576_v52  ;;  %v577_v19 = vld [vmem:[%s3171_s16 + $0xf8] sm:$0xff]  ;;  %s2025_s16 = sshll.u32 %s3712_s9, 4  ;;  %s3848_s16 = int_to_ptr.vmem [resolvable:$true] %s2025_s16 }
 0x1ab   : > { %v3373_v60 = vadd.f32 %v1071_v36, %v635_v24  ;;  %1174 = vmax.xlane.f32.xlu0 %v1173_v31  ;;  %v640_v36 = vunpack.c.l.bf16 %v577_v19  ;;  %s2779_s10 = scalar_lea.vmem %s3848_s16, 8192 }
 0x1ac   : > { %p2780_p0 = scmp.ne.s32.totalorder %s3848_s16, %s2779_s10 }
 0x1ad   : > { %v1075_v39 = vpop.f32.mrb[58].mxu0  ;;  %v1176_v58 = vmax.f32 %v3371_v43, %v3373_v60 }
 0x1ae   : > { %v3378_v18 = vadd.f32 %v1075_v39, %v636_v45  ;;  %v1077_v0 = vpop.f32.mrb[59].mxu0  ;;  %v641_v39 = vunpack.c.h.bf16 %v577_v19  ;;  %p2781_p1 = pnand %p2780_p0, %p2960_p3 }
 0x1af   : > { %v3380_v8 = vadd.f32 %v1077_v0, %v637_v51  ;;  %1177 = vmax.xlane.f32.xlu0 %v1176_v58 }
 0x1b0   : > { %p2782_p2 = pneg %p2781_p1 }
 0x1b1   : > { %v1081_v32 = vpop.f32.mrb[60].mxu0  ;;  %v1179_v24 = vmax.f32 %v3378_v18, %v3380_v8 }
 0x1b2   : > { %v3385_v28 = vadd.f32 %v1081_v32, %v638_v13  ;;  %v1083_v31 = vpop.f32.mrb[61].mxu0  ;;  %v482_v13 = vld [vmem:[%s3401_s27] sm:$0xff] }
 0x1b3   : > { %v3387_v4 = vadd.f32 %v1083_v31, %v639_v15  ;;  %1180 = vmax.xlane.f32.xlu0 %v1179_v24  ;;  %v483_v15 = vld [vmem:[%s3401_s27 + $0x8] sm:$0xff]  ;;  %v2875_v24 = vmov 0.0|0.0   ;;  %v484_v31 = vld [vmem:[%s3401_s27 + $0x10] sm:$0xff] }
 0x1b4   : > { %v2466_v19 = vpack.c.bf16 %v483_v15, %v482_v13  ;;  %2465 = vmatprep.subr.bf16.mxu1 %v2875_v24  ;;  %v489_v13 = vld [vmem:[%s3401_s27 + $0x38] sm:$0xff] }
 0x1b5   : > { %4029 = vst [vmem:[#allocation16_spill] sm:$0xff] %v3387_v4  ;;  %v1087_v45 = vpop.f32.mrb[62].mxu0  ;;  %v1182_v51 = vmax.f32 %v3385_v28, %v3387_v4 }
 0x1b6   : > { %v3391_v58 = vadd.f32 %v1087_v45, %v640_v36  ;;  %v1089_v52 = vpop.f32.mrb[63].mxu0  ;;  %2467 = vmatpush1.bf16.msra.mxu1 %v2466_v19  ;;  %v485_v36 = vld [vmem:[%s3401_s27 + $0x18] sm:$0xff]  ;;  %v486_v45 = vld [vmem:[%s3401_s27 + $0x20] sm:$0xff] }
 0x1b7   : > { %v3393_v0 = vadd.f32 %v1089_v52, %v641_v39  ;;  %1183 = vmax.xlane.f32.xlu0 %v1182_v51  ;;  %2468 = vmatprep.subr.bf16.mxu1 %v2875_v24  ;;  %v2469_v39 = vpack.c.bf16 %v485_v36, %v484_v31  ;;  %v487_v51 = vld [vmem:[%s3401_s27 + $0x28] sm:$0xff] }
 0x1b8   : > { %4030 = vst [vmem:[#allocation17_spill] sm:$0xff] %v3391_v58  ;;  %v2472_v52 = vpack.c.bf16 %v487_v51, %v486_v45  ;;  %v491_v45 = vld [vmem:[%s3401_s27 + $0x48] sm:$0xff] }
 0x1b9   : > { %4031 = vst [vmem:[#allocation18_spill] sm:$0xff] %v3393_v0  ;;  %v1185_v32 = vmax.f32 %v3391_v58, %v3393_v0 }
 0x1ba   : > { %2470 = vmatpush1.bf16.msra.mxu1 %v2469_v39  ;;  %v490_v39 = vld [vmem:[%s3401_s27 + $0x40] sm:$0xff] }
 0x1bb   : > { %1186 = vmax.xlane.f32.xlu0 %v1185_v32  ;;  %2471 = vmatprep.subr.bf16.mxu1 %v2875_v24  ;;  %v488_v32 = vld [vmem:[%s3401_s27 + $0x30] sm:$0xff] }
 0x1bc   : > { %v2475_v19 = vpack.c.bf16 %v489_v13, %v488_v32 }
 0x1be   : > { %2473 = vmatpush1.bf16.msra.mxu1 %v2472_v52  ;;  %v2478_v52 = vpack.c.bf16 %v491_v45, %v490_v39 }
 0x1bf   : > { %2474 = vmatprep.subr.bf16.mxu1 %v2875_v24 }
 0x1c2   : > { %2476 = vmatpush1.bf16.msra.mxu1 %v2475_v19 }
 0x1c3   : > { %2477 = vmatprep.subr.bf16.mxu1 %v2875_v24 }
 0x1c6   : > { %2479 = vmatpush1.bf16.msra.mxu1 %v2478_v52 }
 0x1c7   : > { %2480 = vmatprep.subr.bf16.mxu1 %v2875_v24 }
 0x1cc   : > { %v1094_v15 = vpop.xlane.xlu0 %1093 }
 0x1cd   : > { %v1188_v0 = vsub.f32 %v3175_v54, %v1094_v15  ;;  %v1189_v58 = vsub.f32 %v3177_v57, %v1094_v15 }
 0x1cf   : > { %v1252_v31 = vmul.f32 1.442695, %v1188_v0  ;;  %v1254_v36 = vmul.f32 1.442695, %v1189_v58  ;;  %v492_v58 = vld [vmem:[%s3401_s27 + $0x50] sm:$0xff]  ;;  %v493_v0 = vld [vmem:[%s3401_s27 + $0x58] sm:$0xff] }
 0x1d0   : > { %v1097_v51 = vpop.xlane.xlu0 %1096  ;;  %v2481_v15 = vpack.c.bf16 %v493_v0, %v492_v58 }
 0x1d1   : > { %2587 = vpow2.f32 %v1252_v31  ;;  %v1190_v4 = vsub.f32 %v3182_v62, %v1097_v51  ;;  %v1191_v32 = vsub.f32 %v3184_v1, %v1097_v51 }
 0x1d2   : > { %2589 = vpow2.f32 %v1254_v36  ;;  %2482 = vmatpush1.bf16.msra.mxu1 %v2481_v15  ;;  %v495_v36 = vld [vmem:[%s3401_s27 + $0x68] sm:$0xff]  ;;  %v498_v15 = vld [vmem:[%s3401_s27 + $0x80] sm:$0xff] }
 0x1d3   : > { %v1256_v54 = vmul.f32 1.442695, %v1190_v4  ;;  %v1258_v57 = vmul.f32 1.442695, %v1191_v32  ;;  %2483 = vmatprep.subr.bf16.mxu1 %v2875_v24  ;;  %v494_v4 = vld [vmem:[%s3401_s27 + $0x60] sm:$0xff] }
 0x1d4   : > { %v1100_v13 = vpop.xlane.xlu1 %1099  ;;  %v2484_v45 = vpack.c.bf16 %v495_v36, %v494_v4 }
 0x1d5   : > { %2591 = vpow2.f32 %v1256_v54  ;;  %v1192_v19 = vsub.f32 %v3189_v6, %v1100_v13  ;;  %v1193_v31 = vsub.f32 %v3191_v9, %v1100_v13  ;;  %v496_v54 = vld [vmem:[%s3401_s27 + $0x70] sm:$0xff] }
 0x1d6   : > { %2593 = vpow2.f32 %v1258_v57  ;;  %2485 = vmatpush1.bf16.msra.mxu1 %v2484_v45  ;;  %v497_v57 = vld [vmem:[%s3401_s27 + $0x78] sm:$0xff] }
 0x1d7   : > { %v1260_v62 = vmul.f32 1.442695, %v1192_v19  ;;  %v1262_v1 = vmul.f32 1.442695, %v1193_v31  ;;  %2486 = vmatprep.subr.bf16.mxu1 %v2875_v24  ;;  %v2487_v13 = vpack.c.bf16 %v497_v57, %v496_v54  ;;  %v501_v45 = vld [vmem:[%s3401_s27 + $0x98] sm:$0xff] }
 0x1d8   : > { %v1103_v39 = vpop.xlane.xlu1 %1102 }
 0x1d9   : > { %2595 = vpow2.f32 %v1260_v62  ;;  %v1194_v51 = vsub.f32 %v3196_v14, %v1103_v39  ;;  %v1195_v6 = vsub.f32 %v3198_v17, %v1103_v39  ;;  %v499_v14 = vld [vmem:[%s3401_s27 + $0x88] sm:$0xff]  ;;  %v500_v39 = vld [vmem:[%s3401_s27 + $0x90] sm:$0xff] }
 0x1da   : > { %2597 = vpow2.f32 %v1262_v1  ;;  %2488 = vmatpush1.bf16.msra.mxu1 %v2487_v13  ;;  %v2490_v62 = vpack.c.bf16 %v499_v14, %v498_v15  ;;  %v502_v13 = vld [vmem:[%s3401_s27 + $0xa0] sm:$0xff]  ;;  %v503_v15 = vld [vmem:[%s3401_s27 + $0xa8] sm:$0xff] }
 0x1db   : > { %v3432_v9 = vpop.eup %2587  ;;  %v1264_v52 = vmul.f32 1.442695, %v1194_v51  ;;  %v1266_v32 = vmul.f32 1.442695, %v1195_v6  ;;  %2489 = vmatprep.subr.bf16.mxu1 %v2875_v24 }
 0x1dc   : > { %v3437_v58 = vpop.eup %2589  ;;  %v1106_v0 = vpop.xlane.xlu0 %1105 }
 0x1dd   : > { %2599 = vpow2.f32 %v1264_v52  ;;  %v1196_v17 = vsub.f32 %v3203_v22, %v1106_v0  ;;  %v1197_v19 = vsub.f32 %v3205_v25, %v1106_v0  ;;  %v1380_v31 = vadd.f32 %v3437_v58, %v3432_v9 }
 0x1de   : > { %2601 = vpow2.f32 %v1266_v32  ;;  %2491 = vmatpush1.bf16.msra.mxu1 %v2490_v62  ;;  %v2493_v32 = vpack.c.bf16 %v501_v45, %v500_v39 }
 0x1df   : > { %v3445_v1 = vpop.eup %2591  ;;  %v1268_v4 = vmul.f32 1.442695, %v1196_v17  ;;  %v1270_v36 = vmul.f32 1.442695, %v1197_v19  ;;  %1381 = vadd.xlane.f32.xlu1 %v1380_v31  ;;  %2492 = vmatprep.subr.bf16.mxu1 %v2875_v24  ;;  %v2496_v31 = vpack.c.bf16 %v503_v15, %v502_v13 }
 0x1e0   : > { %v3450_v22 = vpop.eup %2593  ;;  %v1109_v25 = vpop.xlane.xlu1 %1108 }
 0x1e1   : > { %2603 = vpow2.f32 %v1268_v4  ;;  %v1198_v51 = vsub.f32 %v3210_v30, %v1109_v25  ;;  %v1199_v6 = vsub.f32 %v3212_v33, %v1109_v25  ;;  %v1383_v52 = vadd.f32 %v3450_v22, %v3445_v1 }
 0x1e2   : > { %2605 = vpow2.f32 %v1270_v36  ;;  %2494 = vmatpush1.bf16.msra.mxu1 %v2493_v32  ;;  %v504_v32 = vld [vmem:[%s3401_s27 + $0xb0] sm:$0xff] }
 0x1e3   : > { %v3456_v54 = vpop.eup %2595  ;;  %v1272_v57 = vmul.f32 1.442695, %v1198_v51  ;;  %v1274_v0 = vmul.f32 1.442695, %v1199_v6  ;;  %1384 = vadd.xlane.f32.xlu1 %v1383_v52  ;;  %2495 = vmatprep.subr.bf16.mxu1 %v2875_v24 }
 0x1e4   : > { %v3461_v14 = vpop.eup %2597  ;;  %v1112_v30 = vpop.xlane.xlu0 %1111 }
 0x1e5   : > { %2607 = vpow2.f32 %v1272_v57  ;;  %v1200_v33 = vsub.f32 %v3217_v38, %v1112_v30  ;;  %v1201_v17 = vsub.f32 %v3219_v41, %v1112_v30  ;;  %v1386_v19 = vadd.f32 %v3461_v14, %v3456_v54  ;;  %v505_v57 = vld [vmem:[%s3401_s27 + $0xb8] sm:$0xff] }
 0x1e6   : > { %2609 = vpow2.f32 %v1274_v0  ;;  %2497 = vmatpush1.bf16.msra.mxu1 %v2496_v31  ;;  %v506_v31 = vld [vmem:[%s3401_s27 + $0xc0] sm:$0xff] }
 0x1e7   : > { %v3467_v62 = vpop.eup %2599  ;;  %v1276_v4 = vmul.f32 1.442695, %v1200_v33  ;;  %v1278_v36 = vmul.f32 1.442695, %v1201_v17  ;;  %1387 = vadd.xlane.f32.xlu1 %v1386_v19  ;;  %2498 = vmatprep.subr.bf16.mxu1 %v2875_v24 }
 0x1e8   : > { %v3470_v39 = vpop.eup %2601  ;;  %v1115_v38 = vpop.xlane.xlu1 %1114 }
 0x1e9   : > { %2611 = vpow2.f32 %v1276_v4  ;;  %v1202_v41 = vsub.f32 %v3224_v46, %v1115_v38  ;;  %v1203_v45 = vsub.f32 %v3226_v49, %v1115_v38  ;;  %v1389_v25 = vadd.f32 %v3470_v39, %v3467_v62  ;;  %v507_v4 = vld [vmem:[%s3401_s27 + $0xc8] sm:$0xff] }
 0x1ea   : > { %2613 = vpow2.f32 %v1278_v36  ;;  %v2499_v49 = vpack.c.bf16 %v505_v57, %v504_v32  ;;  %v508_v32 = vld [vmem:[%s3401_s27 + $0xd0] sm:$0xff]  ;;  %v509_v57 = vld [vmem:[%s3401_s27 + $0xd8] sm:$0xff] }
 0x1eb   : > { %v3476_v51 = vpop.eup %2603  ;;  %v1280_v6 = vmul.f32 1.442695, %v1202_v41  ;;  %v1282_v52 = vmul.f32 1.442695, %v1203_v45  ;;  %1390 = vadd.xlane.f32.xlu1 %v1389_v25 }
 0x1ec   : > { %v3481_v0 = vpop.eup %2605  ;;  %v1118_v46 = vpop.xlane.xlu0 %1117  ;;  %2500 = vmatpush1.bf16.msra.mxu1 %v2499_v49 }
 0x1ed   : > { %2615 = vpow2.f32 %v1280_v6  ;;  %v1204_v13 = vsub.f32 %v3231_v55, %v1118_v46  ;;  %v1205_v15 = vsub.f32 %v3233_v59, %v1118_v46  ;;  %v1392_v30 = vadd.f32 %v3481_v0, %v3476_v51  ;;  %2501 = vmatprep.subr.bf16.mxu1 %v2875_v24 }
 0x1ee   : > { %2617 = vpow2.f32 %v1282_v52  ;;  %v2502_v59 = vpack.c.bf16 %v507_v4, %v506_v31  ;;  %v510_v31 = vld [vmem:[%s3401_s27 + $0xe0] sm:$0xff]  ;;  %v511_v4 = vld [vmem:[%s3401_s27 + $0xe8] sm:$0xff] }
 0x1ef   : > { %v3487_v33 = vpop.eup %2607  ;;  %v1284_v17 = vmul.f32 1.442695, %v1204_v13  ;;  %v1286_v19 = vmul.f32 1.442695, %v1205_v15  ;;  %1393 = vadd.xlane.f32.xlu1 %v1392_v30 }
 0x1f0   : > { %v3492_v36 = vpop.eup %2609  ;;  %v1121_v55 = vpop.xlane.xlu1 %1120  ;;  %2503 = vmatpush1.bf16.msra.mxu1 %v2502_v59 }
 0x1f1   : > { %2619 = vpow2.f32 %v1284_v17  ;;  %v1206_v38 = vsub.f32 %v3238_v2, %v1121_v55  ;;  %v1207_v41 = vsub.f32 %v3240_v5, %v1121_v55  ;;  %v1395_v45 = vadd.f32 %v3492_v36, %v3487_v33  ;;  %2504 = vmatprep.subr.bf16.mxu1 %v2875_v24 }
 0x1f2   : > { %2621 = vpow2.f32 %v1286_v19  ;;  %v2505_v5 = vpack.c.bf16 %v509_v57, %v508_v32  ;;  %v512_v32 = vld [vmem:[%s3401_s27 + $0xf0] sm:$0xff]  ;;  %v513_v57 = vld [vmem:[%s3401_s27 + $0xf8] sm:$0xff]  ;;  %s3846_s27 = scalar_lea.hbm %s3979_s5, %s2317_s15 }
 0x1f3   : > { %v3498_v25 = vpop.eup %2611  ;;  %v1288_v6 = vmul.f32 1.442695, %v1206_v38  ;;  %v1290_v52 = vmul.f32 1.442695, %v1207_v41  ;;  %1396 = vadd.xlane.f32.xlu1 %v1395_v45 }
 0x1f4   : > { %v3503_v46 = vpop.eup %2613  ;;  %v1124_v2 = vpop.xlane.xlu0 %1123  ;;  %2506 = vmatpush1.bf16.msra.mxu1 %v2505_v5 }
 0x1f5   : > { %2623 = vpow2.f32 %v1288_v6  ;;  %v1208_v49 = vsub.f32 %v3245_v12, %v1124_v2  ;;  %v1209_v13 = vsub.f32 %v3247_v16, %v1124_v2  ;;  %v1398_v15 = vadd.f32 %v3503_v46, %v3498_v25  ;;  %2507 = vmatprep.subr.bf16.mxu1 %v2875_v24 }
 0x1f6   : > { %2625 = vpow2.f32 %v1290_v52  ;;  %v2508_v16 = vpack.c.bf16 %v511_v4, %v510_v31 }
 0x1f7   : > { %v3509_v30 = vpop.eup %2615  ;;  %v1292_v17 = vmul.f32 1.442695, %v1208_v49  ;;  %v1294_v19 = vmul.f32 1.442695, %v1209_v13  ;;  %1399 = vadd.xlane.f32.xlu1 %v1398_v15 }
 0x1f8   : > { %v3514_v55 = vpop.eup %2617  ;;  %v1127_v12 = vpop.xlane.xlu1 %1126  ;;  %2509 = vmatpush1.bf16.msra.mxu1 %v2508_v16 }
 0x1f9   : > { %2627 = vpow2.f32 %v1292_v17  ;;  %v1210_v59 = vsub.f32 %v3252_v23, %v1127_v12  ;;  %v1211_v38 = vsub.f32 %v3254_v27, %v1127_v12  ;;  %v1401_v41 = vadd.f32 %v3514_v55, %v3509_v30  ;;  %2510 = vmatprep.subr.bf16.mxu1 %v2875_v24 }
 0x1fa   : > { %2629 = vpow2.f32 %v1294_v19  ;;  %v2511_v23 = vpack.c.bf16 %v513_v57, %v512_v32 }
 0x1fb   : > { %v3520_v45 = vpop.eup %2619  ;;  %v1296_v6 = vmul.f32 1.442695, %v1210_v59  ;;  %v1298_v52 = vmul.f32 1.442695, %v1211_v38  ;;  %1402 = vadd.xlane.f32.xlu1 %v1401_v41 }
 0x1fc   : > { %v3525_v2 = vpop.eup %2621  ;;  %v1130_v5 = vpop.xlane.xlu0 %1129  ;;  %2512 = vmatpush1.bf16.msra.mxu1 %v2511_v23 }
 0x1fd   : > { %2631 = vpow2.f32 %v1296_v6  ;;  %v1212_v27 = vsub.f32 %v3259_v34, %v1130_v5  ;;  %v1213_v49 = vsub.f32 %v3261_v37, %v1130_v5  ;;  %v1404_v13 = vadd.f32 %v3525_v2, %v3520_v45 }
 0x1fe   : > { %2633 = vpow2.f32 %v1298_v52 }
 0x1ff   : > { %v3531_v15 = vpop.eup %2623  ;;  %v1300_v17 = vmul.f32 1.442695, %v1212_v27  ;;  %v1302_v24 = vmul.f32 1.442695, %v1213_v49  ;;  %1405 = vadd.xlane.f32.xlu1 %v1404_v13 }
 0x200   : > { %v3533_v19 = vpop.eup %2625  ;;  %v1133_v31 = vpop.xlane.xlu1 %1132 }
 0x201   : > { %2635 = vpow2.f32 %v1300_v17  ;;  %v1214_v4 = vsub.f32 %v3266_v44, %v1133_v31  ;;  %v1215_v34 = vsub.f32 %v3268_v48, %v1133_v31  ;;  %v1407_v37 = vadd.f32 %v3533_v19, %v3531_v15 }
 0x202   : > { %2637 = vpow2.f32 %v1302_v24 }
 0x203   : > { %v3539_v12 = vpop.eup %2627  ;;  %v1304_v16 = vmul.f32 1.442695, %v1214_v4  ;;  %v1306_v59 = vmul.f32 1.442695, %v1215_v34  ;;  %1408 = vadd.xlane.f32.xlu1 %v1407_v37 }
 0x204   : > { %v3541_v38 = vpop.eup %2629  ;;  %v1136_v41 = vpop.xlane.xlu0 %1135 }
 0x205   : > { %2639 = vpow2.f32 %v1304_v16  ;;  %v1216_v6 = vsub.f32 %v3273_v56, %v1136_v41  ;;  %v1217_v52 = vsub.f32 %v3275_v61, %v1136_v41  ;;  %v1410_v44 = vadd.f32 %v3541_v38, %v3539_v12 }
 0x206   : > { %2641 = vpow2.f32 %v1306_v59 }
 0x207   : > { %v3547_v48 = vpop.eup %2631  ;;  %v1308_v32 = vmul.f32 1.442695, %v1216_v6  ;;  %v1310_v57 = vmul.f32 1.442695, %v1217_v52  ;;  %1411 = vadd.xlane.f32.xlu0 %v1410_v44 }
 0x208   : > { %v3549_v5 = vpop.eup %2633  ;;  %v1139_v23 = vpop.xlane.xlu1 %1138 }
 0x209   : > { %2643 = vpow2.f32 %v1308_v32  ;;  %v1218_v27 = vsub.f32 %v3280_v7, %v1139_v23  ;;  %v1219_v49 = vsub.f32 %v3282_v11, %v1139_v23  ;;  %v1413_v56 = vadd.f32 %v3549_v5, %v3547_v48 }
 0x20a   : > { %2645 = vpow2.f32 %v1310_v57 }
 0x20b   : > { %v3555_v61 = vpop.eup %2635  ;;  %v1312_v13 = vmul.f32 1.442695, %v1218_v27  ;;  %v1314_v17 = vmul.f32 1.442695, %v1219_v49  ;;  %1414 = vadd.xlane.f32.xlu1 %v1413_v56 }
 0x20c   : > { %v3557_v24 = vpop.eup %2637  ;;  %v1142_v31 = vpop.xlane.xlu0 %1141 }
 0x20d   : > { %2647 = vpow2.f32 %v1312_v13  ;;  %v1220_v4 = vsub.f32 %v3287_v20, %v1142_v31  ;;  %v1221_v34 = vsub.f32 %v3289_v26, %v1142_v31  ;;  %v1416_v7 = vadd.f32 %v3557_v24, %v3555_v61 }
 0x20e   : > { %2649 = vpow2.f32 %v1314_v17 }
 0x20f   : > { %v3563_v11 = vpop.eup %2639  ;;  %v1316_v37 = vmul.f32 1.442695, %v1220_v4  ;;  %v1318_v16 = vmul.f32 1.442695, %v1221_v34  ;;  %1417 = vadd.xlane.f32.xlu0 %v1416_v7 }
 0x210   : > { %v3565_v59 = vpop.eup %2641  ;;  %v1145_v41 = vpop.xlane.xlu1 %1144 }
 0x211   : > { %2651 = vpow2.f32 %v1316_v37  ;;  %v1222_v6 = vsub.f32 %v3294_v35, %v1145_v41  ;;  %v1223_v52 = vsub.f32 %v3296_v40, %v1145_v41  ;;  %v1419_v20 = vadd.f32 %v3565_v59, %v3563_v11 }
 0x212   : > { %2653 = vpow2.f32 %v1318_v16 }
 0x213   : > { %v3571_v26 = vpop.eup %2643  ;;  %v1320_v44 = vmul.f32 1.442695, %v1222_v6  ;;  %v1322_v32 = vmul.f32 1.442695, %v1223_v52  ;;  %1420 = vadd.xlane.f32.xlu1 %v1419_v20 }
 0x214   : > { %v3573_v57 = vpop.eup %2645  ;;  %v1148_v23 = vpop.xlane.xlu0 %1147 }
 0x215   : > { %2655 = vpow2.f32 %v1320_v44  ;;  %v1224_v27 = vsub.f32 %v3301_v50, %v1148_v23  ;;  %v1225_v49 = vsub.f32 %v3303_v53, %v1148_v23  ;;  %v1422_v35 = vadd.f32 %v3573_v57, %v3571_v26 }
 0x216   : > { %2657 = vpow2.f32 %v1322_v32 }
 0x217   : > { %v3579_v40 = vpop.eup %2647  ;;  %v1324_v56 = vmul.f32 1.442695, %v1224_v27  ;;  %v1326_v13 = vmul.f32 1.442695, %v1225_v49  ;;  %1423 = vadd.xlane.f32.xlu0 %v1422_v35 }
 0x218   : > { %v3581_v17 = vpop.eup %2649  ;;  %v1151_v31 = vpop.xlane.xlu1 %1150 }
 0x219   : > { %2659 = vpow2.f32 %v1324_v56  ;;  %v1226_v4 = vsub.f32 %v3308_v3, %v1151_v31  ;;  %v1227_v34 = vsub.f32 %v3310_v10, %v1151_v31  ;;  %v1425_v50 = vadd.f32 %v3581_v17, %v3579_v40 }
 0x21a   : > { %2661 = vpow2.f32 %v1326_v13 }
 0x21b   : > { %v3587_v53 = vpop.eup %2651  ;;  %v1328_v7 = vmul.f32 1.442695, %v1226_v4  ;;  %v1330_v37 = vmul.f32 1.442695, %v1227_v34  ;;  %1426 = vadd.xlane.f32.xlu1 %v1425_v50  ;;  %v4032_v34 = vld [vmem:[#allocation5_spill] sm:$0xff] }
 0x21c   : > { %v3589_v16 = vpop.eup %2653  ;;  %v1154_v41 = vpop.xlane.xlu0 %1153 }
 0x21d   : > { %2663 = vpow2.f32 %v1328_v7  ;;  %v1228_v6 = vsub.f32 %v3315_v21, %v1154_v41  ;;  %v1229_v52 = vsub.f32 %v3317_v29, %v1154_v41  ;;  %v1428_v3 = vadd.f32 %v3589_v16, %v3587_v53 }
 0x21e   : > { %2665 = vpow2.f32 %v1330_v37 }
 0x21f   : > { %v3595_v10 = vpop.eup %2655  ;;  %v1332_v20 = vmul.f32 1.442695, %v1228_v6  ;;  %v1334_v44 = vmul.f32 1.442695, %v1229_v52  ;;  %1429 = vadd.xlane.f32.xlu0 %v1428_v3  ;;  %v4033_v52 = vld [vmem:[#allocation6_spill] sm:$0xff] }
 0x220   : > { %v3597_v32 = vpop.eup %2657  ;;  %v1157_v23 = vpop.xlane.xlu1 %1156 }
 0x221   : > { %2667 = vpow2.f32 %v1332_v20  ;;  %v1230_v27 = vsub.f32 %v3322_v42, %v1157_v23  ;;  %v1231_v49 = vsub.f32 %v3324_v47, %v1157_v23  ;;  %v1431_v21 = vadd.f32 %v3597_v32, %v3595_v10  ;;  %v4034_v20 = vld [vmem:[#allocation7_spill] sm:$0xff] }
 0x222   : > { %2669 = vpow2.f32 %v1334_v44 }
 0x223   : > { %v3603_v29 = vpop.eup %2659  ;;  %v1336_v35 = vmul.f32 1.442695, %v1230_v27  ;;  %v1338_v56 = vmul.f32 1.442695, %v1231_v49  ;;  %1432 = vadd.xlane.f32.xlu1 %v1431_v21 }
 0x224   : > { %v3605_v13 = vpop.eup %2661  ;;  %v1160_v31 = vpop.xlane.xlu0 %1159 }
 0x225   : > { %2671 = vpow2.f32 %v1336_v35  ;;  %v1232_v4 = vsub.f32 %v3329_v63, %v1160_v31  ;;  %v1233_v50 = vsub.f32 %v4032_v34, %v1160_v31  ;;  %v1434_v42 = vadd.f32 %v3605_v13, %v3603_v29 }
 0x226   : > { %2673 = vpow2.f32 %v1338_v56  ;;  %v4036_v56 = vld [vmem:[#allocation8_spill] sm:$0xff] }
 0x227   : > { %v3611_v47 = vpop.eup %2663  ;;  %v1340_v7 = vmul.f32 1.442695, %v1232_v4  ;;  %v1342_v37 = vmul.f32 1.442695, %v1233_v50  ;;  %1435 = vadd.xlane.f32.xlu0 %v1434_v42  ;;  %v4037_v4 = vld [vmem:[#allocation9_spill] sm:$0xff] }
 0x228   : > { %v3613_v41 = vpop.eup %2665  ;;  %v1163_v6 = vpop.xlane.xlu0 %1162 }
 0x229   : > { %2675 = vpow2.f32 %v1340_v7  ;;  %v1234_v3 = vsub.f32 %v4033_v52, %v1163_v6  ;;  %v1235_v44 = vsub.f32 %v4034_v20, %v1163_v6  ;;  %v1437_v63 = vadd.f32 %v3613_v41, %v3611_v47 }
 0x22a   : > { %2677 = vpow2.f32 %v1342_v37 }
 0x22b   : > { %v3619_v23 = vpop.eup %2667  ;;  %v1344_v27 = vmul.f32 1.442695, %v1234_v3  ;;  %v1346_v49 = vmul.f32 1.442695, %v1235_v44  ;;  %1438 = vadd.xlane.f32.xlu1 %v1437_v63  ;;  %v4040_v3 = vld [vmem:[#allocation10_spill] sm:$0xff]  ;;  %v4041_v44 = vld [vmem:[#allocation11_spill] sm:$0xff] }
 0x22c   : > { %4035 = vst [vmem:[#allocation5_spill] sm:$0xff] %v3619_v23  ;;  %v3621_v21 = vpop.eup %2669  ;;  %v1166_v35 = vpop.xlane.xlu0 %1165 }
 0x22d   : > { %2679 = vpow2.f32 %v1344_v27  ;;  %v1236_v31 = vsub.f32 %v4036_v56, %v1166_v35  ;;  %v1237_v34 = vsub.f32 %v4037_v4, %v1166_v35  ;;  %v1440_v50 = vadd.f32 %v3621_v21, %v3619_v23 }
 0x22e   : > { %2681 = vpow2.f32 %v1346_v49 }
 0x22f   : > { %v3627_v42 = vpop.eup %2671  ;;  %v1348_v7 = vmul.f32 1.442695, %v1236_v31  ;;  %v1350_v37 = vmul.f32 1.442695, %v1237_v34  ;;  %1441 = vadd.xlane.f32.xlu0 %v1440_v50  ;;  %v4042_v34 = vld [vmem:[#allocation12_spill] sm:$0xff] }
 0x230   : > { %4038 = vst [vmem:[#allocation6_spill] sm:$0xff] %v3627_v42  ;;  %v3629_v6 = vpop.eup %2673  ;;  %v1169_v52 = vpop.xlane.xlu0 %1168 }
 0x231   : > { %4039 = vst [vmem:[#allocation7_spill] sm:$0xff] %v3629_v6  ;;  %2683 = vpow2.f32 %v1348_v7  ;;  %v1238_v20 = vsub.f32 %v4040_v3, %v1169_v52  ;;  %v1239_v63 = vsub.f32 %v4041_v44, %v1169_v52  ;;  %v1443_v27 = vadd.f32 %v3629_v6, %v3627_v42  ;;  %v4043_v7 = vld [vmem:[#allocation13_spill] sm:$0xff] }
 0x232   : > { %2685 = vpow2.f32 %v1350_v37 }
 0x233   : > { %v3635_v35 = vpop.eup %2675  ;;  %v1352_v49 = vmul.f32 1.442695, %v1238_v20  ;;  %v1354_v56 = vmul.f32 1.442695, %v1239_v63  ;;  %1444 = vadd.xlane.f32.xlu1 %v1443_v27  ;;  %v4044_v27 = vld [vmem:[#allocation14_spill] sm:$0xff] }
 0x234   : > { %v3637_v31 = vpop.eup %2677  ;;  %v1172_v4 = vpop.xlane.xlu0 %1171 }
 0x235   : > { %2687 = vpow2.f32 %v1352_v49  ;;  %v1240_v50 = vsub.f32 %v4042_v34, %v1172_v4  ;;  %v1241_v23 = vsub.f32 %v4043_v7, %v1172_v4  ;;  %v1446_v52 = vadd.f32 %v3637_v31, %v3635_v35  ;;  %v4045_v49 = vld [vmem:[#allocation15_spill] sm:$0xff] }
 0x236   : > { %2689 = vpow2.f32 %v1354_v56 }
 0x237   : > { %v3643_v3 = vpop.eup %2679  ;;  %v1356_v37 = vmul.f32 1.442695, %v1240_v50  ;;  %v1358_v44 = vmul.f32 1.442695, %v1241_v23  ;;  %1447 = vadd.xlane.f32.xlu0 %v1446_v52 }
 0x238   : > { %v3645_v20 = vpop.eup %2681  ;;  %v1175_v63 = vpop.xlane.xlu0 %1174 }
 0x239   : > { %2691 = vpow2.f32 %v1356_v37  ;;  %v1242_v42 = vsub.f32 %v4044_v27, %v1175_v63  ;;  %v1243_v6 = vsub.f32 %v4045_v49, %v1175_v63  ;;  %v1449_v4 = vadd.f32 %v3645_v20, %v3643_v3 }
 0x23a   : > { %2693 = vpow2.f32 %v1358_v44 }
 0x23b   : > { %v3651_v34 = vpop.eup %2683  ;;  %v1360_v56 = vmul.f32 1.442695, %v1242_v42  ;;  %v1362_v7 = vmul.f32 1.442695, %v1243_v6  ;;  %1450 = vadd.xlane.f32.xlu1 %v1449_v4 }
 0x23c   : > { %4046 = vst [vmem:[#allocation8_spill] sm:$0xff] %v3651_v34  ;;  %v3653_v50 = vpop.eup %2685  ;;  %v1178_v23 = vpop.xlane.xlu0 %1177 }
 0x23d   : > { %2695 = vpow2.f32 %v1360_v56  ;;  %v1244_v52 = vsub.f32 %v3371_v43, %v1178_v23  ;;  %v1245_v37 = vsub.f32 %v3373_v60, %v1178_v23  ;;  %v1452_v63 = vadd.f32 %v3653_v50, %v3651_v34 }
 0x23e   : > { %2697 = vpow2.f32 %v1362_v7 }
 0x23f   : > { %v3659_v27 = vpop.eup %2687  ;;  %v1364_v44 = vmul.f32 1.442695, %v1244_v52  ;;  %v1366_v49 = vmul.f32 1.442695, %v1245_v37  ;;  %1453 = vadd.xlane.f32.xlu0 %v1452_v63 }
 0x240   : > { %4047 = vst [vmem:[#allocation9_spill] sm:$0xff] %v3659_v27  ;;  %v3661_v42 = vpop.eup %2689  ;;  %v1181_v6 = vpop.xlane.xlu0 %1180 }
 0x241   : > { %4048 = vst [vmem:[#allocation10_spill] sm:$0xff] %v3661_v42  ;;  %2699 = vpow2.f32 %v1364_v44  ;;  %v1246_v4 = vsub.f32 %v3378_v18, %v1181_v6  ;;  %v1247_v56 = vsub.f32 %v3380_v8, %v1181_v6  ;;  %v1455_v60 = vadd.f32 %v3661_v42, %v3659_v27  ;;  %v4050_v44 = vld [vmem:[#allocation16_spill] sm:$0xff] }
 0x242   : > { %2701 = vpow2.f32 %v1366_v49 }
 0x243   : > { %v3667_v43 = vpop.eup %2691  ;;  %v1368_v7 = vmul.f32 1.442695, %v1246_v4  ;;  %v1370_v23 = vmul.f32 1.442695, %v1247_v56  ;;  %1456 = vadd.xlane.f32.xlu1 %v1455_v60  ;;  %v4053_v60 = vld [vmem:[#allocation17_spill] sm:$0xff] }
 0x244   : > { %4049 = vst [vmem:[#allocation11_spill] sm:$0xff] %v3667_v43  ;;  %v3669_v52 = vpop.eup %2693  ;;  %v1184_v37 = vpop.xlane.xlu0 %1183 }
 0x245   : > { %2703 = vpow2.f32 %v1368_v7  ;;  %v1248_v63 = vsub.f32 %v3385_v28, %v1184_v37  ;;  %v1249_v34 = vsub.f32 %v4050_v44, %v1184_v37  ;;  %v1458_v8 = vadd.f32 %v3669_v52, %v3667_v43  ;;  %v4054_v7 = vld [vmem:[#allocation18_spill] sm:$0xff] }
 0x246   : > { %2705 = vpow2.f32 %v1370_v23 }
 0x247   : > { %v3675_v18 = vpop.eup %2695  ;;  %v1372_v49 = vmul.f32 1.442695, %v1248_v63  ;;  %v1374_v6 = vmul.f32 1.442695, %v1249_v34  ;;  %1459 = vadd.xlane.f32.xlu0 %v1458_v8 }
 0x248   : > { %4051 = vst [vmem:[#allocation12_spill] sm:$0xff] %v3675_v18  ;;  %v3677_v4 = vpop.eup %2697  ;;  %v1187_v56 = vpop.xlane.xlu0 %1186 }
 0x249   : > { %4052 = vst [vmem:[#allocation13_spill] sm:$0xff] %v3677_v4  ;;  %2707 = vpow2.f32 %v1372_v49  ;;  %v1250_v27 = vsub.f32 %v4053_v60, %v1187_v56  ;;  %v1251_v42 = vsub.f32 %v4054_v7, %v1187_v56  ;;  %v1461_v28 = vadd.f32 %v3677_v4, %v3675_v18 }
 0x24a   : > { %2709 = vpow2.f32 %v1374_v6 }
 0x24b   : > { %v3683_v37 = vpop.eup %2699  ;;  %v1376_v23 = vmul.f32 1.442695, %v1250_v27  ;;  %v1378_v44 = vmul.f32 1.442695, %v1251_v42  ;;  %1462 = vadd.xlane.f32.xlu1 %v1461_v28 }
 0x24c   : > { %4055 = vst [vmem:[#allocation14_spill] sm:$0xff] %v3683_v37  ;;  %v3685_v63 = vpop.eup %2701 }
 0x24d   : > { %4056 = vst [vmem:[#allocation15_spill] sm:$0xff] %v3685_v63  ;;  %2711 = vpow2.f32 %v1376_v23  ;;  %v1464_v34 = vadd.f32 %v3685_v63, %v3683_v37 }
 0x24e   : > { %2713 = vpow2.f32 %v1378_v44 }
 0x24f   : > { %v3689_v8 = vpop.eup %2703  ;;  %1465 = vadd.xlane.f32.xlu0 %v1464_v34 }
 0x250   : > { %4057 = vst [vmem:[#allocation16_spill] sm:$0xff] %v3689_v8  ;;  %v3691_v49 = vpop.eup %2705 }
 0x251   : > { %4058 = vst [vmem:[#allocation17_spill] sm:$0xff] %v3691_v49  ;;  %v1467_v6 = vadd.f32 %v3691_v49, %v3689_v8 }
 0x253   : > { %v3695_v56 = vpop.eup %2707  ;;  %1468 = vadd.xlane.f32.xlu1 %v1467_v6 }
 0x254   : > { %4059 = vst [vmem:[#allocation18_spill] sm:$0xff] %v3695_v56  ;;  %v3697_v27 = vpop.eup %2709 }
 0x255   : > { %4060 = vst [vmem:[#allocation19_spill] sm:$0xff] %v3697_v27  ;;  %v1470_v42 = vadd.f32 %v3697_v27, %v3695_v56 }
 0x257   : > { %v3701_v60 = vpop.eup %2711  ;;  %1471 = vadd.xlane.f32.xlu0 %v1470_v42 }
 0x258   : > { %4061 = vst [vmem:[#allocation20_spill] sm:$0xff] %v3701_v60  ;;  %v3703_v7 = vpop.eup %2713 }
 0x259   : > { %4062 = vst [vmem:[#allocation21_spill] sm:$0xff] %v3703_v7  ;;  %v1473_v28 = vadd.f32 %v3703_v7, %v3701_v60 }
 0x25b   : > { %1474 = vadd.xlane.f32.xlu1 %v1473_v28 }
 0x26c   : > { %v1382_v23 = vpop.xlane.xlu1 %1381 }
 0x26d   : > { %2715 = vrcp.f32 %v1382_v23 }
 0x270   : > { %v1385_v44 = vpop.xlane.xlu1 %1384 }
 0x271   : > { %2717 = vrcp.f32 %v1385_v44 }
 0x274   : > { %v1388_v34 = vpop.xlane.xlu1 %1387 }
 0x275   : > { %2719 = vrcp.f32 %v1388_v34 }
 0x277   : > { %v2716_v6 = vpop.eup %2715 }
 0x278   : > { %v1508_v8 = vmul.f32 %v2716_v6, %v1382_v23  ;;  %v1391_v56 = vpop.xlane.xlu1 %1390 }
 0x279   : > { %2721 = vrcp.f32 %v1391_v56 }
 0x27a   : > { %v1540_v27 = vsub.f32 2.0, %v1508_v8 }
 0x27b   : > { %v2718_v42 = vpop.eup %2717 }
 0x27c   : > { %v1509_v49 = vmul.f32 %v2718_v42, %v1385_v44  ;;  %v1394_v37 = vpop.xlane.xlu1 %1393  ;;  %v1572_v63 = vmul.f32 %v2716_v6, %v1540_v27 }
 0x27d   : > { %2723 = vrcp.f32 %v1394_v37 }
 0x27e   : > { %v1541_v28 = vsub.f32 2.0, %v1509_v49  ;;  %v1605_v60 = vmul.f32 %v3437_v58, %v1572_v63  ;;  %v1604_v7 = vmul.f32 %v3432_v9, %v1572_v63 }
 0x27f   : > { %v2720_v18 = vpop.eup %2719 }
 0x280   : > { %v1573_v4 = vmul.f32 %v2718_v42, %v1541_v28  ;;  %v1510_v43 = vmul.f32 %v2720_v18, %v1388_v34  ;;  %1732 = vmatprep.mubr.f32.mxu1 %v1605_v60  ;;  %1926 = vst [vmem:[%s3712_s9 + $0x8] sm:$0xff] %v1605_v60  ;;  %v1397_v8 = vpop.xlane.xlu1 %1396  ;;  %1925 = vst [vmem:[%s3712_s9] sm:$0xff] %v1604_v7 }
 0x281   : > { %2725 = vrcp.f32 %v1397_v8  ;;  %1733 = vmatmul.mubr.f32.vlgmr.msra.gmra.mrb[0].mxu1 %v1604_v7 }
 0x282   : > { %v1542_v49 = vsub.f32 2.0, %v1510_v43  ;;  %v1607_v58 = vmul.f32 %v3450_v22, %v1573_v4  ;;  %v1606_v9 = vmul.f32 %v3445_v1, %v1573_v4 }
 0x283   : > { %v2722_v63 = vpop.eup %2721 }
 0x284   : > { %v1574_v27 = vmul.f32 %v2720_v18, %v1542_v49  ;;  %v1511_v23 = vmul.f32 %v2722_v63, %v1391_v56  ;;  %1737 = vmatprep.mubr.f32.mxu1 %v1607_v58  ;;  %1928 = vst [vmem:[%s3712_s9 + $0x18] sm:$0xff] %v1607_v58  ;;  %v1400_v44 = vpop.xlane.xlu1 %1399  ;;  %1927 = vst [vmem:[%s3712_s9 + $0x10] sm:$0xff] %v1606_v9 }
 0x285   : > { %2727 = vrcp.f32 %v1400_v44  ;;  %1738 = vmatmul.mubr.f32.gmra.mrb[2].mxu1 %v1606_v9 }
 0x286   : > { %v1543_v60 = vsub.f32 2.0, %v1511_v23  ;;  %v1609_v34 = vmul.f32 %v3461_v14, %v1574_v27  ;;  %v1608_v43 = vmul.f32 %v3456_v54, %v1574_v27 }
 0x287   : > { %v2724_v7 = vpop.eup %2723 }
 0x288   : > { %v1575_v22 = vmul.f32 %v2722_v63, %v1543_v60  ;;  %v1512_v1 = vmul.f32 %v2724_v7, %v1394_v37  ;;  %1742 = vmatprep.mubr.f32.mxu1 %v1609_v34  ;;  %1930 = vst [vmem:[%s3712_s9 + $0x28] sm:$0xff] %v1609_v34  ;;  %v1403_v18 = vpop.xlane.xlu1 %1402  ;;  %1929 = vst [vmem:[%s3712_s9 + $0x20] sm:$0xff] %v1608_v43 }
 0x289   : > { %2729 = vrcp.f32 %v1403_v18  ;;  %1743 = vmatmul.mubr.f32.gmra.mrb[4].mxu1 %v1608_v43 }
 0x28a   : > { %v1544_v4 = vsub.f32 2.0, %v1512_v1  ;;  %v1611_v56 = vmul.f32 %v3470_v39, %v1575_v22  ;;  %v1610_v6 = vmul.f32 %v3467_v62, %v1575_v22 }
 0x28b   : > { %v2726_v42 = vpop.eup %2725 }
 0x28c   : > { %v1576_v14 = vmul.f32 %v2724_v7, %v1544_v4  ;;  %v1513_v54 = vmul.f32 %v2726_v42, %v1397_v8  ;;  %1747 = vmatprep.mubr.f32.mxu1 %v1611_v56  ;;  %1932 = vst [vmem:[%s3712_s9 + $0x38] sm:$0xff] %v1611_v56  ;;  %v1406_v37 = vpop.xlane.xlu1 %1405  ;;  %1931 = vst [vmem:[%s3712_s9 + $0x30] sm:$0xff] %v1610_v6 }
 0x28d   : > { %2731 = vrcp.f32 %v1406_v37  ;;  %1748 = vmatmul.mubr.f32.gmra.mrb[6].mxu1 %v1610_v6 }
 0x28e   : > { %v1545_v28 = vsub.f32 2.0, %v1513_v54  ;;  %v1613_v49 = vmul.f32 %v3481_v0, %v1576_v14  ;;  %v1612_v58 = vmul.f32 %v3476_v51, %v1576_v14 }
 0x28f   : > { %v2728_v9 = vpop.eup %2727 }
 0x290   : > { %v1577_v39 = vmul.f32 %v2726_v42, %v1545_v28  ;;  %v1514_v62 = vmul.f32 %v2728_v9, %v1400_v44  ;;  %1752 = vmatprep.mubr.f32.mxu1 %v1613_v49  ;;  %1934 = vst [vmem:[%s3712_s9 + $0x48] sm:$0xff] %v1613_v49  ;;  %v1409_v8 = vpop.xlane.xlu1 %1408  ;;  %1933 = vst [vmem:[%s3712_s9 + $0x40] sm:$0xff] %v1612_v58 }
 0x291   : > { %2733 = vrcp.f32 %v1409_v8  ;;  %1753 = vmatmul.mubr.f32.gmra.mrb[8].mxu1 %v1612_v58 }
 0x292   : > { %v1546_v63 = vsub.f32 2.0, %v1514_v62  ;;  %v1615_v27 = vmul.f32 %v3492_v36, %v1577_v39  ;;  %v1614_v23 = vmul.f32 %v3487_v33, %v1577_v39 }
 0x293   : > { %v2730_v60 = vpop.eup %2729 }
 0x294   : > { %v1578_v0 = vmul.f32 %v2728_v9, %v1546_v63  ;;  %v1515_v51 = vmul.f32 %v2730_v60, %v1403_v18  ;;  %1757 = vmatprep.mubr.f32.mxu1 %v1615_v27  ;;  %1936 = vst [vmem:[%s3712_s9 + $0x58] sm:$0xff] %v1615_v27  ;;  %v1412_v44 = vpop.xlane.xlu0 %1411  ;;  %1935 = vst [vmem:[%s3712_s9 + $0x50] sm:$0xff] %v1614_v23 }
 0x295   : > { %2735 = vrcp.f32 %v1412_v44  ;;  %1758 = vmatmul.mubr.f32.gmra.mrb[10].mxu1 %v1614_v23 }
 0x296   : > { %v1547_v34 = vsub.f32 2.0, %v1515_v51  ;;  %v1617_v43 = vmul.f32 %v3503_v46, %v1578_v0  ;;  %v1616_v7 = vmul.f32 %v3498_v25, %v1578_v0 }
 0x297   : > { %v2732_v22 = vpop.eup %2731 }
 0x298   : > { %v1579_v36 = vmul.f32 %v2730_v60, %v1547_v34  ;;  %v1516_v33 = vmul.f32 %v2732_v22, %v1406_v37  ;;  %1762 = vmatprep.mubr.f32.mxu1 %v1617_v43  ;;  %1938 = vst [vmem:[%s3712_s9 + $0x68] sm:$0xff] %v1617_v43  ;;  %v1415_v1 = vpop.xlane.xlu1 %1414  ;;  %1937 = vst [vmem:[%s3712_s9 + $0x60] sm:$0xff] %v1616_v7 }
 0x299   : > { %2737 = vrcp.f32 %v1415_v1  ;;  %1763 = vmatmul.mubr.f32.gmra.mrb[12].mxu1 %v1616_v7 }
 0x29a   : > { %v1548_v18 = vsub.f32 2.0, %v1516_v33  ;;  %v1619_v4 = vmul.f32 %v3514_v55, %v1579_v36  ;;  %v1618_v56 = vmul.f32 %v3509_v30, %v1579_v36 }
 0x29b   : > { %v2734_v6 = vpop.eup %2733 }
 0x29c   : > { %v1580_v46 = vmul.f32 %v2732_v22, %v1548_v18  ;;  %v1517_v25 = vmul.f32 %v2734_v6, %v1409_v8  ;;  %1767 = vmatprep.mubr.f32.mxu1 %v1619_v4  ;;  %1940 = vst [vmem:[%s3712_s9 + $0x78] sm:$0xff] %v1619_v4  ;;  %v1418_v42 = vpop.xlane.xlu0 %1417  ;;  %1939 = vst [vmem:[%s3712_s9 + $0x70] sm:$0xff] %v1618_v56 }
 0x29d   : > { %2739 = vrcp.f32 %v1418_v42  ;;  %1768 = vmatmul.mubr.f32.gmra.mrb[14].mxu1 %v1618_v56 }
 0x29e   : > { %v1549_v14 = vsub.f32 2.0, %v1517_v25  ;;  %v1621_v54 = vmul.f32 %v3525_v2, %v1580_v46  ;;  %v1620_v37 = vmul.f32 %v3520_v45, %v1580_v46 }
 0x29f   : > { %v2736_v28 = vpop.eup %2735 }
 0x2a0   : > { %v1581_v55 = vmul.f32 %v2734_v6, %v1549_v14  ;;  %v1518_v30 = vmul.f32 %v2736_v28, %v1412_v44  ;;  %1772 = vmatprep.mubr.f32.mxu1 %v1621_v54  ;;  %1942 = vst [vmem:[%s3712_s9 + $0x88] sm:$0xff] %v1621_v54  ;;  %v1421_v49 = vpop.xlane.xlu1 %1420  ;;  %1941 = vst [vmem:[%s3712_s9 + $0x80] sm:$0xff] %v1620_v37 }
 0x2a1   : > { %2741 = vrcp.f32 %v1421_v49  ;;  %1773 = vmatmul.mubr.f32.gmra.mrb[16].mxu1 %v1620_v37 }
 0x2a2   : > { %v1550_v58 = vsub.f32 2.0, %v1518_v30  ;;  %v1623_v9 = vmul.f32 %v3533_v19, %v1581_v55  ;;  %v1622_v39 = vmul.f32 %v3531_v15, %v1581_v55 }
 0x2a3   : > { %v2738_v62 = vpop.eup %2737 }
 0x2a4   : > { %v1582_v2 = vmul.f32 %v2736_v28, %v1550_v58  ;;  %v1519_v45 = vmul.f32 %v2738_v62, %v1415_v1  ;;  %1777 = vmatprep.mubr.f32.mxu1 %v1623_v9  ;;  %1944 = vst [vmem:[%s3712_s9 + $0x98] sm:$0xff] %v1623_v9  ;;  %v1424_v8 = vpop.xlane.xlu0 %1423  ;;  %1943 = vst [vmem:[%s3712_s9 + $0x90] sm:$0xff] %v1622_v39 }
 0x2a5   : > { %2743 = vrcp.f32 %v1424_v8  ;;  %1778 = vmatmul.mubr.f32.gmra.mrb[18].mxu1 %v1622_v39 }
 0x2a6   : > { %v1551_v63 = vsub.f32 2.0, %v1519_v45  ;;  %v1625_v27 = vmul.f32 %v3541_v38, %v1582_v2  ;;  %v1624_v23 = vmul.f32 %v3539_v12, %v1582_v2 }
 0x2a7   : > { %v2740_v60 = vpop.eup %2739 }
 0x2a8   : > { %v1583_v19 = vmul.f32 %v2738_v62, %v1551_v63  ;;  %v1520_v15 = vmul.f32 %v2740_v60, %v1418_v42  ;;  %v1427_v0 = vpop.xlane.xlu1 %1426  ;;  %1782 = vmatprep.mubr.f32.mxu1 %v1625_v27  ;;  %1946 = vst [vmem:[%s3712_s9 + $0xa8] sm:$0xff] %v1625_v27  ;;  %1945 = vst [vmem:[%s3712_s9 + $0xa0] sm:$0xff] %v1624_v23 }
 0x2a9   : > { %2745 = vrcp.f32 %v1427_v0  ;;  %1783 = vmatmul.mubr.f32.gmra.mrb[20].mxu1 %v1624_v23 }
 0x2aa   : > { %v1552_v51 = vsub.f32 2.0, %v1520_v15  ;;  %v1627_v44 = vmul.f32 %v3549_v5, %v1583_v19  ;;  %v1626_v34 = vmul.f32 %v3547_v48, %v1583_v19 }
 0x2ab   : > { %v2742_v43 = vpop.eup %2741 }
 0x2ac   : > { %v1584_v38 = vmul.f32 %v2740_v60, %v1552_v51  ;;  %v1521_v12 = vmul.f32 %v2742_v43, %v1421_v49  ;;  %1787 = vmatprep.mubr.f32.mxu1 %v1627_v44  ;;  %1948 = vst [vmem:[%s3712_s9 + $0xb8] sm:$0xff] %v1627_v44  ;;  %v1430_v7 = vpop.xlane.xlu0 %1429  ;;  %1947 = vst [vmem:[%s3712_s9 + $0xb0] sm:$0xff] %v1626_v34 }
 0x2ad   : > { %2747 = vrcp.f32 %v1430_v7  ;;  %1788 = vmatmul.mubr.f32.gmra.mrb[22].mxu1 %v1626_v34 }
 0x2ae   : > { %v1553_v22 = vsub.f32 2.0, %v1521_v12  ;;  %v1629_v36 = vmul.f32 %v3557_v24, %v1584_v38  ;;  %v1628_v33 = vmul.f32 %v3555_v61, %v1584_v38 }
 0x2af   : > { %v2744_v1 = vpop.eup %2743 }
 0x2b0   : > { %v1585_v5 = vmul.f32 %v2742_v43, %v1553_v22  ;;  %v1522_v48 = vmul.f32 %v2744_v1, %v1424_v8  ;;  %v1433_v18 = vpop.xlane.xlu1 %1432  ;;  %1792 = vmatprep.mubr.f32.mxu1 %v1629_v36  ;;  %1950 = vst [vmem:[%s3712_s9 + $0xc8] sm:$0xff] %v1629_v36  ;;  %1949 = vst [vmem:[%s3712_s9 + $0xc0] sm:$0xff] %v1628_v33 }
 0x2b1   : > { %2749 = vrcp.f32 %v1433_v18  ;;  %1793 = vmatmul.mubr.f32.gmra.mrb[24].mxu1 %v1628_v33 }
 0x2b2   : > { %v1554_v4 = vsub.f32 2.0, %v1522_v48  ;;  %v1631_v56 = vmul.f32 %v3565_v59, %v1585_v5  ;;  %v1630_v6 = vmul.f32 %v3563_v11, %v1585_v5 }
 0x2b3   : > { %v2746_v46 = vpop.eup %2745 }
 0x2b4   : > { %v1586_v24 = vmul.f32 %v2744_v1, %v1554_v4  ;;  %v1523_v61 = vmul.f32 %v2746_v46, %v1427_v0  ;;  %1797 = vmatprep.mubr.f32.mxu1 %v1631_v56  ;;  %1952 = vst [vmem:[%s3712_s9 + $0xd8] sm:$0xff] %v1631_v56  ;;  %v1436_v25 = vpop.xlane.xlu0 %1435  ;;  %1951 = vst [vmem:[%s3712_s9 + $0xd0] sm:$0xff] %v1630_v6  ;;  %v4063_v1 = vld [vmem:[#allocation5_spill] sm:$0xff]  ;;  %v4064_v56 = vld [vmem:[#allocation7_spill] sm:$0xff] }
 0x2b5   : > { %2751 = vrcp.f32 %v1436_v25  ;;  %1798 = vmatmul.mubr.f32.gmra.mrb[26].mxu1 %v1630_v6 }
 0x2b6   : > { %v1555_v42 = vsub.f32 2.0, %v1523_v61  ;;  %v1633_v14 = vmul.f32 %v3573_v57, %v1586_v24  ;;  %v1632_v54 = vmul.f32 %v3571_v26, %v1586_v24 }
 0x2b7   : > { %v2748_v37 = vpop.eup %2747 }
 0x2b8   : > { %v1587_v59 = vmul.f32 %v2746_v46, %v1555_v42  ;;  %v1524_v11 = vmul.f32 %v2748_v37, %v1430_v7  ;;  %v1439_v28 = vpop.xlane.xlu1 %1438  ;;  %1802 = vmatprep.mubr.f32.mxu1 %v1633_v14  ;;  %1954 = vst [vmem:[%s3712_s9 + $0xe8] sm:$0xff] %v1633_v14  ;;  %1953 = vst [vmem:[%s3712_s9 + $0xe0] sm:$0xff] %v1632_v54  ;;  %v4065_v46 = vld [vmem:[#allocation6_spill] sm:$0xff] }
 0x2b9   : > { %2753 = vrcp.f32 %v1439_v28  ;;  %1803 = vmatmul.mubr.f32.gmra.mrb[28].mxu1 %v1632_v54 }
 0x2ba   : > { %v1556_v55 = vsub.f32 2.0, %v1524_v11  ;;  %v1635_v30 = vmul.f32 %v3581_v17, %v1587_v59  ;;  %v1634_v49 = vmul.f32 %v3579_v40, %v1587_v59 }
 0x2bb   : > { %v2750_v58 = vpop.eup %2749 }
 0x2bc   : > { %v1588_v57 = vmul.f32 %v2748_v37, %v1556_v55  ;;  %v1525_v26 = vmul.f32 %v2750_v58, %v1433_v18  ;;  %1807 = vmatprep.mubr.f32.mxu1 %v1635_v30  ;;  %1956 = vst [vmem:[%s3712_s9 + $0xf8] sm:$0xff] %v1635_v30  ;;  %v1442_v9 = vpop.xlane.xlu0 %1441  ;;  %1955 = vst [vmem:[%s3712_s9 + $0xf0] sm:$0xff] %v1634_v49 }
 0x2bd   : > { %2755 = vrcp.f32 %v1442_v9  ;;  %1808 = vmatmul.mubr.f32.gmra.mrb[30].mxu1 %v1634_v49 }
 0x2be   : > { %v1557_v39 = vsub.f32 2.0, %v1525_v26  ;;  %v1637_v62 = vmul.f32 %v3589_v16, %v1588_v57  ;;  %v1636_v2 = vmul.f32 %v3587_v53, %v1588_v57 }
 0x2bf   : > { %v2752_v45 = vpop.eup %2751 }
 0x2c0   : > { %v1589_v17 = vmul.f32 %v2750_v58, %v1557_v39  ;;  %v1526_v40 = vmul.f32 %v2752_v45, %v1436_v25  ;;  %v1445_v8 = vpop.xlane.xlu1 %1444  ;;  %1812 = vmatprep.mubr.f32.mxu1 %v1637_v62  ;;  %1958 = vst [vmem:[%s3712_s9 + $0x108] sm:$0xff] %v1637_v62  ;;  %1957 = vst [vmem:[%s3712_s9 + $0x100] sm:$0xff] %v1636_v2  ;;  %v4066_v62 = vld [vmem:[#allocation8_spill] sm:$0xff] }
 0x2c1   : > { %2757 = vrcp.f32 %v1445_v8  ;;  %1813 = vmatmul.mubr.f32.gmra.mrb[32].mxu1 %v1636_v2 }
 0x2c2   : > { %v1558_v63 = vsub.f32 2.0, %v1526_v40  ;;  %v1639_v27 = vmul.f32 %v3597_v32, %v1589_v17  ;;  %v1638_v23 = vmul.f32 %v3595_v10, %v1589_v17 }
 0x2c3   : > { %v2754_v60 = vpop.eup %2753 }
 0x2c4   : > { %v1590_v16 = vmul.f32 %v2752_v45, %v1558_v63  ;;  %v1527_v53 = vmul.f32 %v2754_v60, %v1439_v28  ;;  %1817 = vmatprep.mubr.f32.mxu1 %v1639_v27  ;;  %1960 = vst [vmem:[%s3712_s9 + $0x118] sm:$0xff] %v1639_v27  ;;  %v1448_v19 = vpop.xlane.xlu0 %1447  ;;  %1959 = vst [vmem:[%s3712_s9 + $0x110] sm:$0xff] %v1638_v23  ;;  %v4068_v27 = vld [vmem:[#allocation9_spill] sm:$0xff] }
 0x2c5   : > { %2759 = vrcp.f32 %v1448_v19  ;;  %1818 = vmatmul.mubr.f32.gmra.mrb[34].mxu1 %v1638_v23 }
 0x2c6   : > { %v1559_v15 = vsub.f32 2.0, %v1527_v53  ;;  %v1641_v0 = vmul.f32 %v3605_v13, %v1590_v16  ;;  %v1640_v51 = vmul.f32 %v3603_v29, %v1590_v16 }
 0x2c7   : > { %v2756_v44 = vpop.eup %2755 }
 0x2c8   : > { %v1591_v32 = vmul.f32 %v2754_v60, %v1559_v15  ;;  %v1528_v10 = vmul.f32 %v2756_v44, %v1442_v9  ;;  %v1451_v34 = vpop.xlane.xlu1 %1450  ;;  %1822 = vmatprep.mubr.f32.mxu1 %v1641_v0  ;;  %1962 = vst [vmem:[%s3712_s9 + $0x128] sm:$0xff] %v1641_v0  ;;  %1961 = vst [vmem:[%s3712_s9 + $0x120] sm:$0xff] %v1640_v51  ;;  %v4069_v0 = vld [vmem:[#allocation11_spill] sm:$0xff] }
 0x2c9   : > { %2761 = vrcp.f32 %v1451_v34  ;;  %1823 = vmatmul.mubr.f32.gmra.mrb[36].mxu1 %v1640_v51 }
 0x2ca   : > { %v1560_v43 = vsub.f32 2.0, %v1528_v10  ;;  %v1643_v38 = vmul.f32 %v3613_v41, %v1591_v32  ;;  %v1642_v12 = vmul.f32 %v3611_v47, %v1591_v32 }
 0x2cb   : > { %v2758_v7 = vpop.eup %2757 }
 0x2cc   : > { %v1592_v13 = vmul.f32 %v2756_v44, %v1560_v43  ;;  %v1529_v29 = vmul.f32 %v2758_v7, %v1445_v8  ;;  %1827 = vmatprep.mubr.f32.mxu1 %v1643_v38  ;;  %1964 = vst [vmem:[%s3712_s9 + $0x138] sm:$0xff] %v1643_v38  ;;  %v1454_v22 = vpop.xlane.xlu0 %1453  ;;  %1963 = vst [vmem:[%s3712_s9 + $0x130] sm:$0xff] %v1642_v12  ;;  %v4067_v8 = vld [vmem:[#allocation10_spill] sm:$0xff]  ;;  %v4070_v38 = vld [vmem:[#allocation13_spill] sm:$0xff] }
 0x2cd   : > { %2763 = vrcp.f32 %v1454_v22  ;;  %1828 = vmatmul.mubr.f32.gmra.mrb[38].mxu1 %v1642_v12 }
 0x2ce   : > { %v1561_v36 = vsub.f32 2.0, %v1529_v29  ;;  %v1645_v33 = vmul.f32 %v3621_v21, %v1592_v13  ;;  %v1644_v5 = vmul.f32 %v4063_v1, %v1592_v13 }
 0x2cf   : > { %v2760_v48 = vpop.eup %2759 }
 0x2d0   : > { %v1593_v41 = vmul.f32 %v2758_v7, %v1561_v36  ;;  %v1530_v47 = vmul.f32 %v2760_v48, %v1448_v19  ;;  %v1457_v18 = vpop.xlane.xlu1 %1456  ;;  %1832 = vmatprep.mubr.f32.mxu1 %v1645_v33  ;;  %1966 = vst [vmem:[%s3712_s9 + $0x148] sm:$0xff] %v1645_v33  ;;  %1965 = vst [vmem:[%s3712_s9 + $0x140] sm:$0xff] %v1644_v5  ;;  %v4071_v7 = vld [vmem:[#allocation12_spill] sm:$0xff]  ;;  %v4072_v33 = vld [vmem:[#allocation15_spill] sm:$0xff] }
 0x2d1   : > { %2765 = vrcp.f32 %v1457_v18  ;;  %1833 = vmatmul.mubr.f32.gmra.mrb[40].mxu1 %v1644_v5  ;;  %v4073_v5 = vld [vmem:[#allocation14_spill] sm:$0xff] }
 0x2d2   : > { %v1562_v4 = vsub.f32 2.0, %v1530_v47  ;;  %v1647_v6 = vmul.f32 %v4064_v56, %v1593_v41  ;;  %v1646_v24 = vmul.f32 %v4065_v46, %v1593_v41  ;;  %v4074_v56 = vld [vmem:[#allocation17_spill] sm:$0xff]  ;;  %v4075_v46 = vld [vmem:[#allocation16_spill] sm:$0xff] }
 0x2d3   : > { %v2762_v61 = vpop.eup %2761 }
 0x2d4   : > { %v1594_v21 = vmul.f32 %v2760_v48, %v1562_v4  ;;  %v1531_v25 = vmul.f32 %v2762_v61, %v1451_v34  ;;  %1837 = vmatprep.mubr.f32.mxu1 %v1647_v6  ;;  %1968 = vst [vmem:[%s3712_s9 + $0x158] sm:$0xff] %v1647_v6  ;;  %v1460_v42 = vpop.xlane.xlu0 %1459  ;;  %1967 = vst [vmem:[%s3712_s9 + $0x150] sm:$0xff] %v1646_v24 }
 0x2d5   : > { %2767 = vrcp.f32 %v1460_v42  ;;  %1838 = vmatmul.mubr.f32.gmra.mrb[42].mxu1 %v1646_v24 }
 0x2d6   : > { %v1563_v14 = vsub.f32 2.0, %v1531_v25  ;;  %v1649_v54 = vmul.f32 %v3637_v31, %v1594_v21  ;;  %v1648_v37 = vmul.f32 %v3635_v35, %v1594_v21 }
 0x2d7   : > { %v2764_v59 = vpop.eup %2763 }
 0x2d8   : > { %v1595_v11 = vmul.f32 %v2762_v61, %v1563_v14  ;;  %v1532_v28 = vmul.f32 %v2764_v59, %v1454_v22  ;;  %v1463_v55 = vpop.xlane.xlu1 %1462  ;;  %1842 = vmatprep.mubr.f32.mxu1 %v1649_v54  ;;  %1970 = vst [vmem:[%s3712_s9 + $0x168] sm:$0xff] %v1649_v54  ;;  %1969 = vst [vmem:[%s3712_s9 + $0x160] sm:$0xff] %v1648_v37  ;;  %v4076_v14 = vld [vmem:[#allocation19_spill] sm:$0xff] }
 0x2d9   : > { %2769 = vrcp.f32 %v1463_v55  ;;  %1843 = vmatmul.mubr.f32.gmra.mrb[44].mxu1 %v1648_v37  ;;  %v4077_v37 = vld [vmem:[#allocation18_spill] sm:$0xff] }
 0x2da   : > { %v1564_v30 = vsub.f32 2.0, %v1532_v28  ;;  %v1651_v49 = vmul.f32 %v3645_v20, %v1595_v11  ;;  %v1650_v58 = vmul.f32 %v3643_v3, %v1595_v11  ;;  %v4078_v28 = vld [vmem:[#allocation21_spill] sm:$0xff] }
 0x2db   : > { %v2766_v57 = vpop.eup %2765 }
 0x2dc   : > { %v1596_v31 = vmul.f32 %v2764_v59, %v1564_v30  ;;  %v1533_v35 = vmul.f32 %v2766_v57, %v1457_v18  ;;  %1847 = vmatprep.mubr.f32.mxu1 %v1651_v49  ;;  %1972 = vst [vmem:[%s3712_s9 + $0x178] sm:$0xff] %v1651_v49  ;;  %v1466_v26 = vpop.xlane.xlu0 %1465  ;;  %1971 = vst [vmem:[%s3712_s9 + $0x170] sm:$0xff] %v1650_v58  ;;  %v4079_v30 = vld [vmem:[#allocation20_spill] sm:$0xff] }
 0x2dd   : > { %2771 = vrcp.f32 %v1466_v26  ;;  %1848 = vmatmul.mubr.f32.gmra.mrb[46].mxu1 %v1650_v58 }
 0x2de   : > { %v1565_v9 = vsub.f32 2.0, %v1533_v35  ;;  %v1653_v39 = vmul.f32 %v3653_v50, %v1596_v31  ;;  %v1652_v2 = vmul.f32 %v4066_v62, %v1596_v31 }
 0x2df   : > { %v2768_v45 = vpop.eup %2767 }
 0x2e0   : > { %v1597_v20 = vmul.f32 %v2766_v57, %v1565_v9  ;;  %v1534_v3 = vmul.f32 %v2768_v45, %v1460_v42  ;;  %v1469_v17 = vpop.xlane.xlu1 %1468  ;;  %1852 = vmatprep.mubr.f32.mxu1 %v1653_v39  ;;  %1974 = vst [vmem:[%s3712_s9 + $0x188] sm:$0xff] %v1653_v39  ;;  %1973 = vst [vmem:[%s3712_s9 + $0x180] sm:$0xff] %v1652_v2 }
 0x2e1   : > { %2773 = vrcp.f32 %v1469_v17  ;;  %1853 = vmatmul.mubr.f32.gmra.mrb[48].mxu1 %v1652_v2 }
 0x2e2   : > { %v1566_v40 = vsub.f32 2.0, %v1534_v3  ;;  %v1655_v63 = vmul.f32 %v4067_v8, %v1597_v20  ;;  %v1654_v23 = vmul.f32 %v4068_v27, %v1597_v20 }
 0x2e3   : > { %v2770_v60 = vpop.eup %2769 }
 0x2e4   : > { %v1598_v50 = vmul.f32 %v2768_v45, %v1566_v40  ;;  %v1535_v16 = vmul.f32 %v2770_v60, %v1463_v55  ;;  %1857 = vmatprep.mubr.f32.mxu1 %v1655_v63  ;;  %1976 = vst [vmem:[%s3712_s9 + $0x198] sm:$0xff] %v1655_v63  ;;  %v1472_v53 = vpop.xlane.xlu0 %1471  ;;  %1975 = vst [vmem:[%s3712_s9 + $0x190] sm:$0xff] %v1654_v23 }
 0x2e5   : > { %2775 = vrcp.f32 %v1472_v53  ;;  %1858 = vmatmul.mubr.f32.gmra.mrb[50].mxu1 %v1654_v23 }
 0x2e6   : > { %v1567_v19 = vsub.f32 2.0, %v1535_v16  ;;  %v1657_v15 = vmul.f32 %v3669_v52, %v1598_v50  ;;  %v1656_v51 = vmul.f32 %v4069_v0, %v1598_v50 }
 0x2e7   : > { %v2772_v44 = vpop.eup %2771 }
 0x2e8   : > { %v1599_v32 = vmul.f32 %v2770_v60, %v1567_v19  ;;  %v1536_v10 = vmul.f32 %v2772_v44, %v1466_v26  ;;  %v1475_v34 = vpop.xlane.xlu1 %1474  ;;  %1862 = vmatprep.mubr.f32.mxu1 %v1657_v15  ;;  %1978 = vst [vmem:[%s3712_s9 + $0x1a8] sm:$0xff] %v1657_v15  ;;  %1977 = vst [vmem:[%s3712_s9 + $0x1a0] sm:$0xff] %v1656_v51 }
 0x2e9   : > { %2777 = vrcp.f32 %v1475_v34  ;;  %1863 = vmatmul.mubr.f32.gmra.mrb[52].mxu1 %v1656_v51 }
 0x2ea   : > { %v1568_v43 = vsub.f32 2.0, %v1536_v10  ;;  %v1659_v12 = vmul.f32 %v4070_v38, %v1599_v32  ;;  %v1658_v13 = vmul.f32 %v4071_v7, %v1599_v32 }
 0x2eb   : > { %v2774_v52 = vpop.eup %2773 }
 0x2ec   : > { %v1600_v29 = vmul.f32 %v2772_v44, %v1568_v43  ;;  %v1537_v22 = vmul.f32 %v2774_v52, %v1469_v17  ;;  %1867 = vmatprep.mubr.f32.mxu1 %v1659_v12  ;;  %1980 = vst [vmem:[%s3712_s9 + $0x1b8] sm:$0xff] %v1659_v12  ;;  %1979 = vst [vmem:[%s3712_s9 + $0x1b0] sm:$0xff] %v1658_v13 }
 0x2ed   : > { %1868 = vmatmul.mubr.f32.gmra.mrb[54].mxu1 %v1658_v13 }
 0x2ee   : > { %v1569_v36 = vsub.f32 2.0, %v1537_v22  ;;  %v1661_v1 = vmul.f32 %v4072_v33, %v1600_v29  ;;  %v1660_v48 = vmul.f32 %v4073_v5, %v1600_v29 }
 0x2ef   : > { %v2776_v41 = vpop.eup %2775 }
 0x2f0   : > { %v1601_v47 = vmul.f32 %v2774_v52, %v1569_v36  ;;  %v1538_v18 = vmul.f32 %v2776_v41, %v1472_v53  ;;  %1872 = vmatprep.mubr.f32.mxu1 %v1661_v1  ;;  %1982 = vst [vmem:[%s3712_s9 + $0x1c8] sm:$0xff] %v1661_v1  ;;  %1981 = vst [vmem:[%s3712_s9 + $0x1c0] sm:$0xff] %v1660_v48 }
 0x2f1   : > { %1873 = vmatmul.mubr.f32.gmra.mrb[56].mxu1 %v1660_v48 }
 0x2f2   : > { %v1570_v4 = vsub.f32 2.0, %v1538_v18  ;;  %v1663_v6 = vmul.f32 %v4074_v56, %v1601_v47  ;;  %v1662_v24 = vmul.f32 %v4075_v46, %v1601_v47 }
 0x2f3   : > { %v2778_v61 = vpop.eup %2777 }
 0x2f4   : > { %v1602_v21 = vmul.f32 %v2776_v41, %v1570_v4  ;;  %v1539_v25 = vmul.f32 %v2778_v61, %v1475_v34  ;;  %1877 = vmatprep.mubr.f32.mxu1 %v1663_v6  ;;  %1984 = vst [vmem:[%s3712_s9 + $0x1d8] sm:$0xff] %v1663_v6  ;;  %1983 = vst [vmem:[%s3712_s9 + $0x1d0] sm:$0xff] %v1662_v24 }
 0x2f5   : > { %1878 = vmatmul.mubr.f32.gmra.mrb[58].mxu1 %v1662_v24 }
 0x2f6   : > { %v1571_v42 = vsub.f32 2.0, %v1539_v25  ;;  %v1665_v54 = vmul.f32 %v4076_v14, %v1602_v21  ;;  %v1664_v59 = vmul.f32 %v4077_v37, %v1602_v21 }
 0x2f8   : > { %v1603_v11 = vmul.f32 %v2778_v61, %v1571_v42  ;;  %1882 = vmatprep.mubr.f32.mxu1 %v1665_v54  ;;  %1986 = vst [vmem:[%s3712_s9 + $0x1e8] sm:$0xff] %v1665_v54  ;;  %1985 = vst [vmem:[%s3712_s9 + $0x1e0] sm:$0xff] %v1664_v59 }
 0x2f9   : > { %1883 = vmatmul.mubr.f32.gmra.mrb[60].mxu1 %v1664_v59 }
 0x2fa   : > { %v1667_v55 = vmul.f32 %v4078_v28, %v1603_v11  ;;  %v1666_v49 = vmul.f32 %v4079_v30, %v1603_v11 }
 0x2fc   : > { %1887 = vmatprep.mubr.f32.mxu1 %v1667_v55  ;;  %1988 = vst [vmem:[%s3712_s9 + $0x1f8] sm:$0xff] %v1667_v55  ;;  %1987 = vst [vmem:[%s3712_s9 + $0x1f0] sm:$0xff] %v1666_v49  ;;  %s2876_s9 = smov [#allocation2]  }
 0x2fd   : > { %1888 = vmatmul.mubr.f32.gmra.mrb[62].mxu1 %v1666_v49  ;;  %s2783_s13 = sshll.u32 %s2876_s9, 4  ;;  %s2784_s13 = int_to_ptr.vmem [resolvable:$false] %s2783_s13 }
 0x2fe   : > { %s2785_s14 = scalar_lea.vmem %s2784_s13, 16384  ;;  %p2786_p4 = scmp.lt.s32.totalorder %s3848_s16, %s2784_s13 }
 0x2ff   : > { %p2787_p5 = scmp.lt.s32.totalorder %s2785_s14, %s2779_s10 }
 0x301   : > { %p2788_p6 = por %p2787_p5, %p2786_p4 }
 0x303   : > { %p2789_p7 = pnand %p2788_p6, %p2782_p2 }
 0x305   : > { %2792 = shalt.err (!%p2789_p7)
}
 0x306   : > { %s2793_s17 = scalar_lea.hbm %s3846_s27, 8192  ;;  %s2797_s12 = scalar_lea.hbm %s3979_s5, 32768 }
 0x307   : > { %p2794_p9 = scmp.ne.s32.totalorder %s3846_s27, %s2793_s17  ;;  %p2798_p12 = scmp.lt.u32.totalorder %s3846_s27, %s3979_s5 }
 0x308   : > { %p2799_p13 = scmp.lt.u32.totalorder %s2797_s12, %s2793_s17  ;;  %p2801_p1 = scmp.lt.u32.totalorder %s2793_s17, %s3846_s27 }
 0x309   : > { %p2795_p10 = pnand %p2794_p9, %p2960_p3 }
 0x30a   : > { %p2800_p0 = por %p2799_p13, %p2798_p12 }
 0x30b   : > { %p2796_p11 = pneg %p2795_p10 }
 0x30c   : > { %p2802_p2 = por %p2801_p1, %p2800_p0 }
 0x30e   : > { %p2803_p4 = pnand %p2802_p2, %p2796_p11 }
 0x310   : > { %2806 = shalt.err (!%p2803_p4)
}
 0x311   : > { %s2877_s21 = smov 256   ;;  %s2878_s10 = smov 16  }
 0x312   : > { %2513 = dma.vmem_to_hbm [thread:$0]  (%p2960_p3), %s3848_s16, 8192, %s3846_s27, %s3858_s22, %s2877_s21, %s2877_s21, %s2878_s10  }
 0x354   : > { %v1734_v58 = vpop.f32.mrb[0].mxu1 }
 0x355   : > { %1893 = vst.msk [vmem:[%s3854_s0] sm:$0xff] %vm642_vm0, %v1734_v58  ;;  %v1736_v57 = vpop.f32.mrb[1].mxu1 }
 0x358   : > { %v1739_v31 = vpop.f32.mrb[2].mxu1 }
 0x359   : > { %1894 = vst.msk [vmem:[%s3854_s0 + $0x8] sm:$0xff] %vm642_vm0, %v1739_v31  ;;  %v1741_v35 = vpop.f32.mrb[3].mxu1 }
 0x35c   : > { %v1744_v26 = vpop.f32.mrb[4].mxu1 }
 0x35d   : > { %1895 = vst.msk [vmem:[%s3854_s0 + $0x10] sm:$0xff] %vm642_vm0, %v1744_v26  ;;  %v1746_v9 = vpop.f32.mrb[5].mxu1 }
 0x360   : > { %v1749_v39 = vpop.f32.mrb[6].mxu1 }
 0x361   : > { %1896 = vst.msk [vmem:[%s3854_s0 + $0x18] sm:$0xff] %vm642_vm0, %v1749_v39  ;;  %v1751_v62 = vpop.f32.mrb[7].mxu1 }
 0x364   : > { %v1754_v2 = vpop.f32.mrb[8].mxu1 }
 0x365   : > { %1897 = vst.msk [vmem:[%s3854_s0 + $0x20] sm:$0xff] %vm642_vm0, %v1754_v2  ;;  %v1756_v45 = vpop.f32.mrb[9].mxu1 }
 0x368   : > { %v1759_v20 = vpop.f32.mrb[10].mxu1 }
 0x369   : > { %1898 = vst.msk [vmem:[%s3854_s0 + $0x28] sm:$0xff] %vm642_vm0, %v1759_v20  ;;  %v1761_v3 = vpop.f32.mrb[11].mxu1 }
 0x36c   : > { %v1764_v17 = vpop.f32.mrb[12].mxu1 }
 0x36d   : > { %1899 = vst.msk [vmem:[%s3854_s0 + $0x30] sm:$0xff] %vm642_vm0, %v1764_v17  ;;  %v1766_v40 = vpop.f32.mrb[13].mxu1 }
 0x370   : > { %v1769_v8 = vpop.f32.mrb[14].mxu1 }
 0x371   : > { %1900 = vst.msk [vmem:[%s3854_s0 + $0x38] sm:$0xff] %vm642_vm0, %v1769_v8  ;;  %v1771_v63 = vpop.f32.mrb[15].mxu1 }
 0x374   : > { %v1774_v27 = vpop.f32.mrb[16].mxu1 }
 0x375   : > { %1901 = vst.msk [vmem:[%s3854_s0 + $0x40] sm:$0xff] %vm642_vm0, %v1774_v27  ;;  %v1776_v23 = vpop.f32.mrb[17].mxu1 }
 0x378   : > { %v1779_v60 = vpop.f32.mrb[18].mxu1 }
 0x379   : > { %1902 = vst.msk [vmem:[%s3854_s0 + $0x48] sm:$0xff] %vm642_vm0, %v1779_v60  ;;  %v1781_v50 = vpop.f32.mrb[19].mxu1 }
 0x37c   : > { %v1784_v16 = vpop.f32.mrb[20].mxu1 }
 0x37d   : > { %1903 = vst.msk [vmem:[%s3854_s0 + $0x50] sm:$0xff] %vm642_vm0, %v1784_v16  ;;  %v1786_v53 = vpop.f32.mrb[21].mxu1 }
 0x380   : > { %v1789_v19 = vpop.f32.mrb[22].mxu1 }
 0x381   : > { %1904 = vst.msk [vmem:[%s3854_s0 + $0x58] sm:$0xff] %vm642_vm0, %v1789_v19  ;;  %v1791_v15 = vpop.f32.mrb[23].mxu1 }
 0x384   : > { %v1794_v0 = vpop.f32.mrb[24].mxu1 }
 0x385   : > { %1905 = vst.msk [vmem:[%s3854_s0 + $0x60] sm:$0xff] %vm642_vm0, %v1794_v0  ;;  %v1796_v51 = vpop.f32.mrb[25].mxu1 }
 0x388   : > { %v1799_v44 = vpop.f32.mrb[26].mxu1 }
 0x389   : > { %1906 = vst.msk [vmem:[%s3854_s0 + $0x68] sm:$0xff] %vm642_vm0, %v1799_v44  ;;  %v1801_v32 = vpop.f32.mrb[27].mxu1 }
 0x38c   : > { %v1804_v10 = vpop.f32.mrb[28].mxu1 }
 0x38d   : > { %1907 = vst.msk [vmem:[%s3854_s0 + $0x70] sm:$0xff] %vm642_vm0, %v1804_v10  ;;  %v1806_v34 = vpop.f32.mrb[29].mxu1 }
 0x390   : > { %v1809_v43 = vpop.f32.mrb[30].mxu1 }
 0x391   : > { %1908 = vst.msk [vmem:[%s3854_s0 + $0x78] sm:$0xff] %vm642_vm0, %v1809_v43  ;;  %v1811_v38 = vpop.f32.mrb[31].mxu1 }
 0x394   : > { %v1814_v12 = vpop.f32.mrb[32].mxu1 }
 0x395   : > { %1909 = vst.msk [vmem:[%s3854_s0 + $0x80] sm:$0xff] %vm642_vm0, %v1814_v12  ;;  %v1816_v7 = vpop.f32.mrb[33].mxu1 }
 0x398   : > { %v1819_v13 = vpop.f32.mrb[34].mxu1 }
 0x399   : > { %1910 = vst.msk [vmem:[%s3854_s0 + $0x88] sm:$0xff] %vm642_vm0, %v1819_v13  ;;  %v1821_v52 = vpop.f32.mrb[35].mxu1 }
 0x39c   : > { %v1824_v29 = vpop.f32.mrb[36].mxu1 }
 0x39d   : > { %1911 = vst.msk [vmem:[%s3854_s0 + $0x90] sm:$0xff] %vm642_vm0, %v1824_v29  ;;  %v1826_v22 = vpop.f32.mrb[37].mxu1 }
 0x3a0   : > { %v1829_v36 = vpop.f32.mrb[38].mxu1 }
 0x3a1   : > { %1912 = vst.msk [vmem:[%s3854_s0 + $0x98] sm:$0xff] %vm642_vm0, %v1829_v36  ;;  %v1831_v33 = vpop.f32.mrb[39].mxu1 }
 0x3a4   : > { %v1834_v1 = vpop.f32.mrb[40].mxu1 }
 0x3a5   : > { %1913 = vst.msk [vmem:[%s3854_s0 + $0xa0] sm:$0xff] %vm642_vm0, %v1834_v1  ;;  %v1836_v5 = vpop.f32.mrb[41].mxu1 }
 0x3a8   : > { %v1839_v48 = vpop.f32.mrb[42].mxu1 }
 0x3a9   : > { %1914 = vst.msk [vmem:[%s3854_s0 + $0xa8] sm:$0xff] %vm642_vm0, %v1839_v48  ;;  %v1841_v41 = vpop.f32.mrb[43].mxu1 }
 0x3ac   : > { %v1844_v47 = vpop.f32.mrb[44].mxu1 }
 0x3ad   : > { %1915 = vst.msk [vmem:[%s3854_s0 + $0xb0] sm:$0xff] %vm642_vm0, %v1844_v47  ;;  %v1846_v18 = vpop.f32.mrb[45].mxu1 }
 0x3b0   : > { %v1849_v4 = vpop.f32.mrb[46].mxu1 }
 0x3b1   : > { %1916 = vst.msk [vmem:[%s3854_s0 + $0xb8] sm:$0xff] %vm642_vm0, %v1849_v4  ;;  %v1851_v56 = vpop.f32.mrb[47].mxu1 }
 0x3b4   : > { %v1854_v6 = vpop.f32.mrb[48].mxu1 }
 0x3b5   : > { %1917 = vst.msk [vmem:[%s3854_s0 + $0xc0] sm:$0xff] %vm642_vm0, %v1854_v6  ;;  %v1856_v46 = vpop.f32.mrb[49].mxu1 }
 0x3b8   : > { %v1859_v24 = vpop.f32.mrb[50].mxu1 }
 0x3b9   : > { %1918 = vst.msk [vmem:[%s3854_s0 + $0xc8] sm:$0xff] %vm642_vm0, %v1859_v24  ;;  %v1861_v61 = vpop.f32.mrb[51].mxu1 }
 0x3bc   : > { %v1864_v21 = vpop.f32.mrb[52].mxu1 }
 0x3bd   : > { %1919 = vst.msk [vmem:[%s3854_s0 + $0xd0] sm:$0xff] %vm642_vm0, %v1864_v21  ;;  %v1866_v25 = vpop.f32.mrb[53].mxu1 }
 0x3c0   : > { %v1869_v42 = vpop.f32.mrb[54].mxu1 }
 0x3c1   : > { %1920 = vst.msk [vmem:[%s3854_s0 + $0xd8] sm:$0xff] %vm642_vm0, %v1869_v42  ;;  %v1871_v14 = vpop.f32.mrb[55].mxu1 }
 0x3c4   : > { %v1874_v54 = vpop.f32.mrb[56].mxu1 }
 0x3c5   : > { %1921 = vst.msk [vmem:[%s3854_s0 + $0xe0] sm:$0xff] %vm642_vm0, %v1874_v54  ;;  %v1876_v37 = vpop.f32.mrb[57].mxu1 }
 0x3c8   : > { %v1879_v59 = vpop.f32.mrb[58].mxu1 }
 0x3c9   : > { %1922 = vst.msk [vmem:[%s3854_s0 + $0xe8] sm:$0xff] %vm642_vm0, %v1879_v59  ;;  %v1881_v11 = vpop.f32.mrb[59].mxu1 }
 0x3cc   : > { %v1884_v28 = vpop.f32.mrb[60].mxu1 }
 0x3cd   : > { %1923 = vst.msk [vmem:[%s3854_s0 + $0xf0] sm:$0xff] %vm642_vm0, %v1884_v28  ;;  %v1886_v55 = vpop.f32.mrb[61].mxu1 }
 0x3d0   : > { %v1889_v30 = vpop.f32.mrb[62].mxu1 }
 0x3d1   : > { %1924 = vst.msk [vmem:[%s3854_s0 + $0xf8] sm:$0xff] %vm642_vm0, %v1889_v30  ;;  %v1891_v49 = vpop.f32.mrb[63].mxu1 }
 0x3d2 PF: > { %p2519_p3 = scmp.ge.s32.totalorder %s2873_s25, 2  ;;  %s2056_s6 = sand.u32 1, %s2845_s18  }
 0x3d3   : > { %s2057_s16 = scalar_lea.sflag [#allocation3], %s2056_s6 }
 0x3d4   : > { %p2516_p5 = pnand %p2519_p3, %p2969_p8 }
 0x3d6   : > { %2840 = dma.done.wait (!%p2516_p5), %s2057_s16, 8192  }
 0x3d7   : > { %2842 = vsyncadd (!%p2516_p5), %s2057_s16, 4294959104  ;;  %s19_s25 = sadd.s32 1, %s2873_s25   ;;  %s4081_s18 = smov %s2849_s19 }
 0x3d8   : > { %p16_p6 = scmp.ge.s32.totalorder %s19_s25, 6   ;;  %s4082_s19 = smov %s2853_s20 }
 0x3d9   : > { %s4083_s20 = smov %s2978_s11  ;;  %s4084_s21 = smov %s2865_s23 }
 0x3da   : > { %s4085_s22 = smov %s2869_s24  ;;  %s4086_s23 = smov %s4089_s28 }
 0x3db   : > { %s4087_s24 = smov %s4093_s29  ;;  %18 = sbr.rel (!%p16_p6) target bundleno = 7 (0x7), region = 92 }
 0x3e2   :  { %2062 = vsyncpa [#allocation3], 1 }
 0x3e3   :  { %2064 = vsyncpa [#allocation3 + $0x1], 1 }

</bundles_post_ra>
